<compile_context>
chip_gen: v7x
topology: tpu7x:2x2x1
jax: 0.10.0
libtpu: 0.0.40
codegen_flags: <defaults>
</compile_context>

<pallas_src>
import jax
import jax.numpy as jnp
import numpy as np
from jax import lax
from jax.experimental import pallas as pl
from jax.experimental.pallas import tpu as pltpu

# hyper-parameters from args
XI = 1e-6          # self.XI (only enters via the XI -> 0 linearization)
EPS_RADIUS = 3.5   # args.radius
# args.n_power == 1, so the perturbation loop body is unrolled exactly once.


def vat_kernel(logit_ref, weight_ref, d0_ref, w_bf_ref, wt_bf_ref, w_f32_ref, out_ref):
    logit = logit_ref[...]     # (TB, C) f32   model(x) = x @ W + b, precomputed
    weight = weight_ref[...]   # (1,  C) f32   per-class weight (broadcast over batch)
    d0 = d0_ref[...]           # (TB, D) bf16  torch.randn_like(x) (random direction)
    W_bf = w_bf_ref[...]       # (D,  C) bf16  direction-path weights
    WT_bf = wt_bf_ref[...]     # (C,  D) bf16  host-pretransposed (no XLU transpose here)
    W_f32 = w_f32_ref[...]     # (D,  C) f32   loss-path weights (kept f32)

    # ---- softmax / log-softmax statistics of `logit`, computed ONCE ----
    m = jnp.max(logit, axis=1, keepdims=True)
    z = logit - m
    e = jnp.exp(z)
    s = jnp.sum(e, axis=1, keepdims=True)
    inv_s = 1.0 / s                 # exact: q0 feeds the loss value; (TB,1) divide is negligible
    q0 = e * inv_s                  # softmax(logit)
    log_q0 = z - jnp.log(s)         # log_softmax(logit)

    # ---- generateVirtualAdversarialPerturbation (n_power = 1), XI -> 0 limit ----
    # logit == X @ W + b, so model(X + d) = logit + d @ W; X never enters the kernel.
    # Every step from d0 to the final L2 normalization is linear in d0, so the
    # explicit getNormalizedVector(d0) is a mathematical no-op and is skipped.
    # bf16 MXU operands (f32 accumulation): the direction is re-normalized below.
    u = jnp.dot(d0, W_bf, preferred_element_type=jnp.float32)                # (TB, C)
    # torch.autograd.grad(klDivLogit(logit, model(x + XI*dhat)), d) direction
    #   = [softmax-JVP at logit along u] @ W^T   (scalar XI/B factor cancels)
    dp = q0 * (u - jnp.sum(q0 * u, axis=1, keepdims=True))
    grad_d = jnp.dot(dp.astype(jnp.bfloat16), WT_bf,
                     preferred_element_type=jnp.float32)                     # (TB, D)
    # 1/||grad_d||_2, clamping the *squared* norm (== F.normalize clamp); rsqrt -> EUP
    inv_g = lax.rsqrt(jnp.maximum(jnp.sum(grad_d * grad_d, axis=1, keepdims=True), 1e-24))

    # ---- virtualAdvLoss: klDivLogit_withWeight(logit, model(x + r_vadv), weight) ----
    # Loss path stays f32.  r_vadv = EPS * grad_d / ||grad_d||; the per-row scale
    # is folded into the (TB, C) result instead of scaling the (TB, D) operand.
    adv = jnp.dot(grad_d, W_f32, preferred_element_type=jnp.float32)         # (TB, C)
    logit_m2 = logit + (EPS_RADIUS * inv_g) * adv
    m2 = jnp.max(logit_m2, axis=1, keepdims=True)
    z2 = logit_m2 - m2
    log_p2 = z2 - jnp.log(jnp.sum(jnp.exp(z2), axis=1, keepdims=True))

    q = q0 * weight                                # reuses the deduped softmax
    per_row = jnp.sum(q * (log_q0 - log_p2), axis=1, keepdims=True)   # (TB, 1)
    partial = jnp.sum(per_row, axis=0, keepdims=True)                 # (1, 1)
    # Lane-dense (8, 128) write -> unmasked vst, no sub-lane-width writeback.
    out_ref[...] = jnp.broadcast_to(partial, (8, 128))


def vat_loss_pallas(logit, weight, d0, W, *, tile_b=128):
    B, C = logit.shape
    D = d0.shape[1]
    assert B % tile_b == 0, "pad the batch to a multiple of tile_b"
    # Keep num_tiles even at production (e.g. tile_b=256 for B=512) so the
    # "parallel" grid axis shards cleanly across both v7x TensorCores.
    num_tiles = B // tile_b

    # Pad the class dim to a multiple of 128 lanes: logit pads with a large
    # *finite* negative (never -inf: 0 * -inf would NaN), weight / W columns
    # with zeros, so padded classes carry zero softmax mass and zero weight
    # and contribute exactly 0 to the loss.
    C_pad = ((C + 127) // 128) * 128
    if C_pad != C:
        pad = C_pad - C
        logit = jnp.pad(logit, ((0, 0), (0, pad)), constant_values=-1e9)
        weight = jnp.pad(weight, ((0, 0), (0, pad)))
        W = jnp.pad(W, ((0, 0), (0, pad)))

    # TODO(synk): hoist these casts / the transpose out of the per-call path when
    # W is reused across calls (they re-materialize (D,C)/(C,D) arrays in HBM).
    W_f32 = W.astype(jnp.float32)      # loss-path matmul stays f32
    W_bf = W.astype(jnp.bfloat16)      # direction matmuls: bf16 MXU-native
    WT_bf = jnp.transpose(W_bf)        # host-pretransposed: no in-kernel XLU transpose
    d0_bf = d0.astype(jnp.bfloat16)    # random direction only -> halve its HBM stream
    # (d0 could instead be generated in-kernel via pltpu.prng_seed/stateful_normal,
    #  dropping the stream entirely; kept as an input so the reference matches.)

    resident = dict(pipeline_mode=pl.Buffered(1))  # constant index_map -> single-buffered

    partials = pl.pallas_call(
        vat_kernel,
        out_shape=jax.ShapeDtypeStruct((num_tiles, 8, 128), jnp.float32),
        grid=(num_tiles,),
        in_specs=[
            pl.BlockSpec((tile_b, C_pad), lambda i: (i, 0)),            # logit  (tiled)
            pl.BlockSpec((1, C_pad), lambda i: (0, 0), **resident),     # weight (resident)
            pl.BlockSpec((tile_b, D), lambda i: (i, 0)),                # d0 bf16 (tiled)
            pl.BlockSpec((D, C_pad), lambda i: (0, 0), **resident),     # W bf16  (resident)
            pl.BlockSpec((C_pad, D), lambda i: (0, 0), **resident),     # W^T bf16 (resident)
            pl.BlockSpec((D, C_pad), lambda i: (0, 0), **resident),     # W f32   (resident)
        ],
        out_specs=pl.BlockSpec((None, 8, 128), lambda i: (i, 0, 0)),
        compiler_params=pltpu.CompilerParams(
            # batch tiles are fully independent -> pipelined + megacore-shardable
            dimension_semantics=("parallel",)),
    )(logit, weight, d0_bf, W_bf, WT_bf, W_f32)

    # finish the batch mean outside the kernel: mean(qlogq) - mean(qlogp)
    return jnp.sum(partials[:, 0, 0]) / jnp.float32(B)


# ---- pure-JAX reference (mirrors the PyTorch module; the finite-XI autograd
#      step is evaluated in its XI -> 0 limit via jax.jvp, which the XI = 1e-6
#      step approximates to O(1e-6) and which is numerically stable in f32) ----
def vat_loss_ref(logit, weight, d0, W):
    HI = jax.lax.Precision.HIGHEST

    def normalize(v):
        n = jnp.sqrt(jnp.sum(v * v, axis=1, keepdims=True))
        return v / jnp.maximum(n, 1e-12)

    dhat = normalize(d0)
    u = jnp.dot(dhat, W, precision=HI)             # model(x + d) - model(x), up to XI
    # torch.autograd.grad(KL, d) direction in the XI -> 0 limit:
    q0, dp = jax.jvp(lambda z: jax.nn.softmax(z, axis=1), (logit,), (u,))
    grad_d = jnp.dot(dp, W.T, precision=HI)
    r_vadv = EPS_RADIUS * normalize(grad_d)

    logit_m2 = logit + jnp.dot(r_vadv, W, precision=HI)
    q = q0 * weight
    qlogq = jnp.mean(jnp.sum(q * jax.nn.log_softmax(logit, axis=1), axis=1))
    qlogp = jnp.mean(jnp.sum(q * jax.nn.log_softmax(logit_m2, axis=1), axis=1))
    return qlogq - qlogp


if __name__ == "__main__":
    key = jax.random.PRNGKey(0)
    kx, kd, kw, kb, kwt = jax.random.split(key, 5)

    # small analogue of (batch_size, resSize, nclass_all) = (512, 2048, 200)
    B, D, C = 256, 256, 128

    X = jax.random.normal(kx, (B, D), dtype=jnp.float32)
    W = jax.random.normal(kw, (D, C), dtype=jnp.float32) * (1.0 / np.sqrt(D))
    bias = jax.random.normal(kb, (1, C), dtype=jnp.float32) * 0.01
    # `logit` input of forward() -- produced by the same linear head the kernel
    # assumes (the logit_m = logit + d @ W rewrite requires logit == X@W + b).
    logit = jnp.dot(X, W, precision=jax.lax.Precision.HIGHEST) + bias
    weight = jax.random.uniform(kwt, (1, C), dtype=jnp.float32,
                                minval=0.5, maxval=1.5)   # per-class weight
    d0 = jax.random.normal(kd, (B, D), dtype=jnp.float32)  # torch.randn_like(x)

    loss = jax.block_until_ready(vat_loss_pallas(logit, weight, d0, W))
    ref = jax.block_until_ready(vat_loss_ref(logit, weight, d0, W))

    np.testing.assert_allclose(np.asarray(loss), np.asarray(ref),
                               rtol=5e-3, atol=2e-4)
    print("KERNEL_OK")
</pallas_src>

<mosaic_0001>
module attributes {stable_mosaic.version = 11 : i64} {
  func.func @vat_kernel(%arg0: i32, %arg1: memref<128x128xf32, #tpu.memory_space<vmem>>, %arg2: memref<1x128xf32, #tpu.memory_space<vmem>>, %arg3: memref<128x256xbf16, #tpu.memory_space<vmem>>, %arg4: memref<256x128xbf16, #tpu.memory_space<vmem>>, %arg5: memref<128x256xbf16, #tpu.memory_space<vmem>>, %arg6: memref<256x128xf32, #tpu.memory_space<vmem>>, %arg7: memref<1x8x128xf32, #tpu.memory_space<vmem>>) attributes {dimension_semantics = [#tpu.dimension_semantics<parallel>], iteration_bounds = array<i64: 2>, scalar_prefetch = 0 : i64, scratch_operands = 0 : i64, tpu.core_type = #tpu.core_type<tc>, window_params = [{transform_indices = @transform_0, window_bounds = array<i64: 128, 128>}, {pipeline_mode = #tpu.pipeline_mode<synchronous>, transform_indices = @transform_1, window_bounds = array<i64: 1, 128>}, {transform_indices = @transform_2, window_bounds = array<i64: 128, 256>}, {pipeline_mode = #tpu.pipeline_mode<synchronous>, transform_indices = @transform_3, window_bounds = array<i64: 256, 128>}, {pipeline_mode = #tpu.pipeline_mode<synchronous>, transform_indices = @transform_4, window_bounds = array<i64: 128, 256>}, {pipeline_mode = #tpu.pipeline_mode<synchronous>, transform_indices = @transform_5, window_bounds = array<i64: 256, 128>}, {transform_indices = @transform_6, window_bounds = array<i64: 1, 8, 128>}]} {
    %c0 = arith.constant 0 : index
    %c0_0 = arith.constant 0 : index
    %0 = vector.load %arg1[%c0, %c0_0] : memref<128x128xf32, #tpu.memory_space<vmem>>, vector<128x128xf32>
    %c0_1 = arith.constant 0 : index
    %c0_2 = arith.constant 0 : index
    %1 = vector.load %arg2[%c0_1, %c0_2] : memref<1x128xf32, #tpu.memory_space<vmem>>, vector<1x128xf32>
    %c0_3 = arith.constant 0 : index
    %c0_4 = arith.constant 0 : index
    %2 = vector.load %arg3[%c0_3, %c0_4] : memref<128x256xbf16, #tpu.memory_space<vmem>>, vector<128x256xbf16>
    %c0_5 = arith.constant 0 : index
    %c0_6 = arith.constant 0 : index
    %3 = vector.load %arg4[%c0_5, %c0_6] : memref<256x128xbf16, #tpu.memory_space<vmem>>, vector<256x128xbf16>
    %c0_7 = arith.constant 0 : index
    %c0_8 = arith.constant 0 : index
    %4 = vector.load %arg5[%c0_7, %c0_8] : memref<128x256xbf16, #tpu.memory_space<vmem>>, vector<128x256xbf16>
    %c0_9 = arith.constant 0 : index
    %c0_10 = arith.constant 0 : index
    %5 = vector.load %arg6[%c0_9, %c0_10] : memref<256x128xf32, #tpu.memory_space<vmem>>, vector<256x128xf32>
    %cst = arith.constant dense<0xFF800000> : vector<128xf32>
    %6 = vector.multi_reduction <maximumf>, %0, %cst [1] : vector<128x128xf32> to vector<128xf32>
    %7 = vector.shape_cast %6 : vector<128xf32> to vector<128x1xf32>
    %8 = vector.broadcast %7 : vector<128x1xf32> to vector<128x128xf32>
    %9 = arith.subf %0, %8 : vector<128x128xf32>
    %10 = math.exp %9 : vector<128x128xf32>
    %cst_11 = arith.constant dense<0.000000e+00> : vector<128xf32>
    %11 = vector.multi_reduction <add>, %10, %cst_11 [1] : vector<128x128xf32> to vector<128xf32>
    %12 = vector.shape_cast %11 : vector<128xf32> to vector<128x1xf32>
    %cst_12 = arith.constant 1.000000e+00 : f32
    %13 = vector.broadcast %cst_12 : f32 to vector<128x1xf32>
    %14 = arith.divf %13, %12 : vector<128x1xf32>
    %15 = vector.broadcast %14 : vector<128x1xf32> to vector<128x128xf32>
    %16 = arith.mulf %10, %15 : vector<128x128xf32>
    %17 = math.log %12 : vector<128x1xf32>
    %18 = vector.broadcast %17 : vector<128x1xf32> to vector<128x128xf32>
    %19 = arith.subf %9, %18 : vector<128x128xf32>
    %cst_13 = arith.constant dense<0.000000e+00> : vector<128x128xf32>
    %20 = tpu.matmul %2, %3, %cst_13 {dimension_numbers = #tpu.dot_dimension_numbers<[1], [0], [0], [1], [0, 0, 1, 1], [], []>} : vector<128x256xbf16>, vector<256x128xbf16>, vector<128x128xf32> -> vector<128x128xf32>
    %21 = arith.mulf %16, %20 : vector<128x128xf32>
    %cst_14 = arith.constant dense<0.000000e+00> : vector<128xf32>
    %22 = vector.multi_reduction <add>, %21, %cst_14 [1] : vector<128x128xf32> to vector<128xf32>
    %23 = vector.shape_cast %22 : vector<128xf32> to vector<128x1xf32>
    %24 = vector.broadcast %23 : vector<128x1xf32> to vector<128x128xf32>
    %25 = arith.subf %20, %24 : vector<128x128xf32>
    %26 = arith.mulf %16, %25 : vector<128x128xf32>
    %27 = arith.truncf %26 : vector<128x128xf32> to vector<128x128xbf16>
    %cst_15 = arith.constant dense<0.000000e+00> : vector<128x256xf32>
    %28 = tpu.matmul %27, %4, %cst_15 {dimension_numbers = #tpu.dot_dimension_numbers<[1], [0], [0], [1], [0, 0, 1, 1], [], []>} : vector<128x128xbf16>, vector<128x256xbf16>, vector<128x256xf32> -> vector<128x256xf32>
    %29 = arith.mulf %28, %28 : vector<128x256xf32>
    %cst_16 = arith.constant dense<0.000000e+00> : vector<128xf32>
    %30 = vector.multi_reduction <add>, %29, %cst_16 [1] : vector<128x256xf32> to vector<128xf32>
    %31 = vector.shape_cast %30 : vector<128xf32> to vector<128x1xf32>
    %cst_17 = arith.constant 1.000000e-24 : f32
    %32 = vector.broadcast %cst_17 : f32 to vector<128x1xf32>
    %33 = arith.maximumf %31, %32 : vector<128x1xf32>
    %34 = math.rsqrt %33 : vector<128x1xf32>
    %cst_18 = arith.constant dense<0.000000e+00> : vector<128x128xf32>
    %35 = tpu.matmul %28, %5, %cst_18 {dimension_numbers = #tpu.dot_dimension_numbers<[1], [0], [0], [1], [0, 0, 1, 1], [], []>} : vector<128x256xf32>, vector<256x128xf32>, vector<128x128xf32> -> vector<128x128xf32>
    %cst_19 = arith.constant 3.500000e+00 : f32
    %36 = vector.broadcast %cst_19 : f32 to vector<128x1xf32>
    %37 = arith.mulf %36, %34 : vector<128x1xf32>
    %38 = vector.broadcast %37 : vector<128x1xf32> to vector<128x128xf32>
    %39 = arith.mulf %38, %35 : vector<128x128xf32>
    %40 = arith.addf %0, %39 : vector<128x128xf32>
    %cst_20 = arith.constant dense<0xFF800000> : vector<128xf32>
    %41 = vector.multi_reduction <maximumf>, %40, %cst_20 [1] : vector<128x128xf32> to vector<128xf32>
    %42 = vector.shape_cast %41 : vector<128xf32> to vector<128x1xf32>
    %43 = vector.broadcast %42 : vector<128x1xf32> to vector<128x128xf32>
    %44 = arith.subf %40, %43 : vector<128x128xf32>
    %45 = math.exp %44 : vector<128x128xf32>
    %cst_21 = arith.constant dense<0.000000e+00> : vector<128xf32>
    %46 = vector.multi_reduction <add>, %45, %cst_21 [1] : vector<128x128xf32> to vector<128xf32>
    %47 = vector.shape_cast %46 : vector<128xf32> to vector<128x1xf32>
    %48 = math.log %47 : vector<128x1xf32>
    %49 = vector.broadcast %48 : vector<128x1xf32> to vector<128x128xf32>
    %50 = arith.subf %44, %49 : vector<128x128xf32>
    %51 = vector.broadcast %1 : vector<1x128xf32> to vector<128x128xf32>
    %52 = arith.mulf %16, %51 : vector<128x128xf32>
    %53 = arith.subf %19, %50 : vector<128x128xf32>
    %54 = arith.mulf %52, %53 : vector<128x128xf32>
    %cst_22 = arith.constant dense<0.000000e+00> : vector<128xf32>
    %55 = vector.multi_reduction <add>, %54, %cst_22 [1] : vector<128x128xf32> to vector<128xf32>
    %56 = vector.shape_cast %55 : vector<128xf32> to vector<128x1xf32>
    %cst_23 = arith.constant dense<0.000000e+00> : vector<1xf32>
    %57 = vector.multi_reduction <add>, %56, %cst_23 [0] : vector<128x1xf32> to vector<1xf32>
    %58 = vector.shape_cast %57 : vector<1xf32> to vector<1x1xf32>
    %59 = vector.shape_cast %58 : vector<1x1xf32> to vector<1x1xf32>
    %60 = vector.broadcast %59 : vector<1x1xf32> to vector<8x128xf32>
    %c0_24 = arith.constant 0 : index
    %c0_25 = arith.constant 0 : index
    %c0_26 = arith.constant 0 : index
    %61 = vector.load %arg7[%c0_24, %c0_25, %c0_26] : memref<1x8x128xf32, #tpu.memory_space<vmem>>, vector<1x8x128xf32>
    %62 = vector.shape_cast %61 : vector<1x8x128xf32> to vector<8x128xf32>
    %63 = vector.shape_cast %60 : vector<8x128xf32> to vector<1x8x128xf32>
    tpu.vector_store %arg7[%c0_24, %c0_25, %c0_26], %63 {strides = array<i32>} : memref<1x8x128xf32, #tpu.memory_space<vmem>>, vector<1x8x128xf32>,
    return
  }
  func.func @transform_0(%arg0: i32) -> (i32, i32) {
    %c0_i32 = arith.constant 0 : i32
    %c0_i32_0 = arith.constant 0 : i32
    return %arg0, %c0_i32 : i32, i32
  }
  func.func @transform_1(%arg0: i32) -> (i32, i32) {
    %c0_i32 = arith.constant 0 : i32
    %c0_i32_0 = arith.constant 0 : i32
    %c0_i32_1 = arith.constant 0 : i32
    return %c0_i32, %c0_i32_0 : i32, i32
  }
  func.func @transform_2(%arg0: i32) -> (i32, i32) {
    %c0_i32 = arith.constant 0 : i32
    %c0_i32_0 = arith.constant 0 : i32
    return %arg0, %c0_i32 : i32, i32
  }
  func.func @transform_3(%arg0: i32) -> (i32, i32) {
    %c0_i32 = arith.constant 0 : i32
    %c0_i32_0 = arith.constant 0 : i32
    %c0_i32_1 = arith.constant 0 : i32
    return %c0_i32, %c0_i32_0 : i32, i32
  }
  func.func @transform_4(%arg0: i32) -> (i32, i32) {
    %c0_i32 = arith.constant 0 : i32
    %c0_i32_0 = arith.constant 0 : i32
    %c0_i32_1 = arith.constant 0 : i32
    return %c0_i32, %c0_i32_0 : i32, i32
  }
  func.func @transform_5(%arg0: i32) -> (i32, i32) {
    %c0_i32 = arith.constant 0 : i32
    %c0_i32_0 = arith.constant 0 : i32
    %c0_i32_1 = arith.constant 0 : i32
    return %c0_i32, %c0_i32_0 : i32, i32
  }
  func.func @transform_6(%arg0: i32) -> (i32, i32, i32) {
    %c0_i32 = arith.constant 0 : i32
    %c0_i32_0 = arith.constant 0 : i32
    %c0_i32_1 = arith.constant 0 : i32
    return %arg0, %c0_i32, %c0_i32_0 : i32, i32, i32
  }
}

</mosaic_0001>

<bundles_post_ra>
// kernel: tpu_custom_call.1
= control target key start
LH: loop header
LB: loop body
LE: loop exit
PB: predicated region body
PF: predicated region fallthrough
CT: control target
= control target key end

     0   :  { %s3756_s0 = inlined_call_operand.hbm [shape: f32[256,128], index: 0, kind: input, shape index: {}]   ;;  %s3757_s1 = inlined_call_operand.vmem [shape: f32[1,128], index: 1, kind: input, shape index: {}]   ;;  %s3758_s2 = inlined_call_operand.hbm [shape: bf16[256,256], index: 2, kind: input, shape index: {}]   ;;  %s3759_s3 = inlined_call_operand.hbm [shape: bf16[256,128], index: 3, kind: input, shape index: {}]   ;;  %s3760_s4 = inlined_call_operand.hbm [shape: bf16[128,256], index: 4, kind: input, shape index: {}]   ;;  %s3761_s5 = inlined_call_operand.hbm [shape: f32[256,128], index: 5, kind: input, shape index: {}]   ;;  %s3762_s6 = inlined_call_operand.hbm [shape: f32[2,8,128], index: 6, kind: output, shape index: {}]  }
   0x1   :  { %3792 = sst [smem:[#allocation38_spill]] %s3756_s0 }
   0x2   :  { %3793 = sst [smem:[#allocation39_spill]] %s3759_s3 }
   0x3   :  { %3794 = sst [smem:[#allocation40_spill]] %s3760_s4 }
   0x4   :  { %3795 = sst [smem:[#allocation41_spill]] %s3761_s5 }
   0x5   :  { %11 = vsyncpa [#allocation3], 0 }
   0x6   :  { %13 = vsyncpa [#allocation3 + $0x1], 0 }
   0x7   :  { %14 = vsyncpa [#allocation6], 0 }
   0x8   :  { %16 = vsyncpa [#allocation6 + $0x1], 0 }
   0x9   :  { %17 = vsyncpa [#allocation9], 0 }
   0xa   :  { %18 = vsyncpa [#allocation4], 0 }
   0xb   :  { %20 = vsyncpa [#allocation4 + $0x1], 0  ;;  %s2837_s21 = smov 0   ;;  %s2839_s22 = smov 0  }
   0xc   :  { %s2841_s23 = smov 0   ;;  %s2843_s24 = smov 0  }
   0xd LB: > { %s2858_s25 = sadd.s32 4294967295, %s2789_s24   ;;  %s1940_s26 = sadd.s32 4294967294, %s2789_s24   ;;  %s2789_s24 = sphi %s2843_s24, %s3864_s24   ;;  %s2785_s23 = sphi %s2841_s23, %s3863_s23   ;;  %s2781_s22 = sphi %s2839_s22, %s3862_s22   ;;  %s2777_s21 = sphi %s2837_s21, %s3861_s21  }
   0xe   : > { %p46_p0 = scmp.ne.s32.totalorder %s2781_s22, %s2777_s21  ;;  %p3763_p1 = scmp.eq.s32.totalorder %s2858_s25, 0 }
   0xf   : > { %p186_p3 = scmp.eq.s32.totalorder %s1940_s26, 1  ;;  %p1941_p5 = scmp.ge.s32.totalorder %s2789_s24, 1 }
  0x10   : > { %p2867_p4 = por %p3763_p1, %p46_p0  ;;  %p193_p7 = scmp.lt.s32.totalorder %s2789_s24, 3 }
  0x11   : > { %p2872_p6 = por %p186_p3, %p46_p0  ;;  %s2791_s30 = smov [#allocation7]  }
  0x12   : > { %s3796_s27 = scalar_select %p2867_p4, 1, 0 }
  0x13   : > { %s3797_s28 = scalar_select %p2872_p6, 1, 0 }
  0x14   : > { %p2877_p8 = pnand %p1941_p5, %p193_p7  ;;  %s208_s7 = sshll.u32 %s2791_s30, 4  ;;  %s2881_s7 = int_to_ptr.vmem [resolvable:$true] %s208_s7 }
  0x15   : > { %s2792_s9 = smov [#allocation8]   ;;  %s3800_s3 = sld [smem:[#allocation39_spill]] }
  0x16   : > { %s3798_s29 = scalar_select %p2877_p8, 1, 0 }
  0x17   : > { %p2226_p9 = pneg %p2877_p8  ;;  %s221_s10 = sshll.u32 %s2792_s9, 4  ;;  %s2892_s10 = int_to_ptr.vmem [resolvable:$true] %s221_s10 }
  0x19   : > { %p2888_p11 = pnand %p2226_p9, %p3763_p1 }
  0x1b   : > { %s2567_s13 = scalar_lea.hbm %s3800_s3, 2048  ;;  %p2902_p13 = pneg %p2888_p11 }
  0x1c   : > { %p2568_p12 = scmp.ne.s32.totalorder %s3800_s3, %s2567_s13  ;;  %p2574_p5 = scmp.lt.u32.totalorder %s2567_s13, %s3800_s3 }
  0x1e   : > { %p2570_p0 = pnand %p2902_p13, %p2568_p12 }
  0x20   : > { %p2571_p3 = pneg %p2570_p0 }
  0x22   : > { %p2576_p7 = pnand %p2574_p5, %p2571_p3 }
  0x24   : > { %2579 = shalt.err (!%p2576_p7)
}
  0x25   : > { %s2580_s19 = scalar_lea.vmem %s2881_s7, 2048  ;;  %p2588_p2 = scmp.lt.s32.totalorder %s2881_s7, %s2881_s7 }
  0x26   : > { %p2581_p9 = scmp.ne.s32.totalorder %s2881_s7, %s2580_s19  ;;  %p2589_p6 = scmp.lt.s32.totalorder %s2580_s19, %s2580_s19 }
  0x28   : > { %p2583_p10 = pnand %p2581_p9, %p2902_p13  ;;  %p2590_p12 = por %p2589_p6, %p2588_p2 }
  0x2a   : > { %p2584_p1 = pneg %p2583_p10 }
  0x2c   : > { %p2591_p0 = pnand %p2590_p12, %p2584_p1 }
  0x2e   : > { %2594 = shalt.err (!%p2591_p0)
}
  0x2f   : > { %s2793_s20 = smov 64   ;;  %s2794_s26 = smov 4  }
  0x30   : > { %2229 = dma.hbm_to_vmem [thread:$0]  (!%p2888_p11), %s3800_s3, 2048, %s2881_s7, [#allocation6], %s2793_s20, %s2793_s20, %s2794_s26  }
  0x31   : > { %s3802_s4 = sld [smem:[#allocation40_spill]] }
  0x37   : > { %s2595_s13 = scalar_lea.hbm %s3802_s4, 2048 }
  0x38   : > { %p2596_p2 = scmp.ne.s32.totalorder %s3802_s4, %s2595_s13  ;;  %p2602_p10 = scmp.lt.u32.totalorder %s2595_s13, %s3802_s4 }
  0x3a   : > { %p2598_p1 = pnand %p2596_p2, %p2902_p13 }
  0x3c   : > { %p2599_p6 = pneg %p2598_p1 }
  0x3e   : > { %p2604_p3 = pnand %p2602_p10, %p2599_p6 }
  0x40   : > { %2607 = shalt.err (!%p2604_p3)
}
  0x41   : > { %s2608_s7 = scalar_lea.vmem %s2892_s10, 2048  ;;  %p2616_p12 = scmp.lt.s32.totalorder %s2892_s10, %s2892_s10 }
  0x42   : > { %p2609_p5 = scmp.ne.s32.totalorder %s2892_s10, %s2608_s7  ;;  %p2617_p0 = scmp.lt.s32.totalorder %s2608_s7, %s2608_s7 }
  0x44   : > { %p2611_p7 = pnand %p2609_p5, %p2902_p13  ;;  %p2618_p2 = por %p2617_p0, %p2616_p12 }
  0x46   : > { %p2612_p9 = pneg %p2611_p7 }
  0x48   : > { %p2619_p1 = pnand %p2618_p2, %p2612_p9 }
  0x4a   : > { %2622 = shalt.err (!%p2619_p1)
}
  0x4b   : > { %s3766_s19 = smov 128   ;;  %s3768_s20 = smov 8  }
  0x4c   : > { %2232 = dma.hbm_to_vmem [thread:$0]  (!%p2888_p11), %s3802_s4, 2048, %s2892_s10, [#allocation9], %s3766_s19, %s3766_s19, %s3768_s20  }
  0x4d   : > { %s2797_s9 = smov [#allocation10]   ;;  %s2950_s12 = sadd.s32 1, %s2789_s24  }
  0x4e   : > { %s234_s11 = sshll.u32 %s2797_s9, 4  ;;  %s3803_s5 = sld [smem:[#allocation41_spill]]  ;;  %s235_s11 = int_to_ptr.vmem [resolvable:$true] %s234_s11 }
  0x54   : > { %s2623_s15 = scalar_lea.hbm %s3803_s5, 4096 }
  0x55   : > { %p2624_p6 = scmp.ne.s32.totalorder %s3803_s5, %s2623_s15  ;;  %p2630_p5 = scmp.lt.u32.totalorder %s2623_s15, %s3803_s5 }
  0x57   : > { %p2626_p10 = pnand %p2624_p6, %p2902_p13 }
  0x59   : > { %p2627_p3 = pneg %p2626_p10 }
  0x5b   : > { %p2632_p7 = pnand %p2630_p5, %p2627_p3 }
  0x5d   : > { %2635 = shalt.err (!%p2632_p7)
}
  0x5e   : > { %s2636_s10 = scalar_lea.vmem %s235_s11, 4096  ;;  %p2644_p2 = scmp.lt.s32.totalorder %s235_s11, %s235_s11 }
  0x5f   : > { %p2637_p9 = scmp.ne.s32.totalorder %s235_s11, %s2636_s10  ;;  %p2645_p1 = scmp.lt.s32.totalorder %s2636_s10, %s2636_s10 }
  0x61   : > { %p2639_p12 = pnand %p2637_p9, %p2902_p13  ;;  %p2646_p4 = por %p2645_p1, %p2644_p2 }
  0x63   : > { %p2640_p0 = pneg %p2639_p12 }
  0x65   : > { %p2647_p8 = pnand %p2646_p4, %p2640_p0 }
  0x67   : > { %2650 = shalt.err (!%p2647_p8)
}
  0x68   : > { %2235 = dma.hbm_to_vmem [thread:$0]  (!%p2888_p11), %s3803_s5, 4096, %s235_s11, [#allocation9], %s3766_s19, %s3766_s19, %s3768_s20  }
  0x69   : > { %s30_s16 = ssub.s32 %s2789_s24, %s2950_s12  ;;  %s33_s8 = sadd.s32 1, %s2785_s23 }
  0x6a   : > { %p31_p4 = scmp.eq.s32.totalorder %s30_s16, 0  ;;  %p40_p8 = scmp.ne.s32.totalorder %s2785_s23, %s2781_s22 }
  0x6b   : > { %p41_p13 = scmp.eq.s32.totalorder %s2789_s24, 0  ;;  %p2250_p6 = scmp.lt.s32.totalorder %s2789_s24, 2 }
  0x6c   : > { %s2981_s30 = scalar_select %p31_p4, %s2785_s23, %s33_s8  }
  0x6d   : > { %p42_p10 = por %p41_p13, %p40_p8  ;;  %p3805_p3 = scmp.eq.s32.totalorder %s2858_s25, 1 }
  0x6e   : > { %3804 = sst [smem:[#allocation17_spill]] %s2981_s30  ;;  %s248_s13 = sand.u32 1, %s2785_s23  }
  0x6f   : > { %p2985_p5 = por %p3805_p3, %p40_p8  ;;  %s2013_s14 = sshll.u32 %s2789_s24, 11 }
  0x70   : > { %s2991_s15 = sshll.u32 %s248_s13, 7  ;;  %s3807_s0 = sld [smem:[#allocation38_spill]] }
  0x71   : > { %s252_s7 = scalar_lea.vmem [#allocation2], %s2991_s15  ;;  %p2999_p11 = pnand %p2250_p6, %p42_p10 }
  0x72   : > { %s259_s10 = sshll.u32 %s252_s7, 4  ;;  %s3008_s8 = scalar_lea.hbm %s3758_s2, %s2013_s14  ;;  %s3003_s10 = int_to_ptr.vmem [resolvable:$true] %s259_s10 }
  0x73   : > { %s3010_s17 = scalar_lea.sflag [#allocation3], %s248_s13  ;;  %p2653_p9 = pneg %p2999_p11 }
  0x76   : > { %s2996_s18 = scalar_lea.hbm %s3807_s0, %s2013_s14  ;;  %s2656_s20 = scalar_lea.hbm %s3807_s0, 4096 }
  0x77   : > { %s2651_s11 = scalar_lea.hbm %s2996_s18, 2048  ;;  %p2657_p2 = scmp.lt.u32.totalorder %s2996_s18, %s3807_s0 }
  0x78   : > { %p2652_p7 = scmp.ne.s32.totalorder %s2996_s18, %s2651_s11  ;;  %p2658_p1 = scmp.lt.u32.totalorder %s2656_s20, %s2651_s11 }
  0x79   : > { %p2660_p8 = scmp.lt.u32.totalorder %s2651_s11, %s2996_s18 }
  0x7a   : > { %p2654_p12 = pnand %p2653_p9, %p2652_p7  ;;  %p2659_p4 = por %p2658_p1, %p2657_p2 }
  0x7c   : > { %p2655_p0 = pneg %p2654_p12  ;;  %p2661_p13 = por %p2660_p8, %p2659_p4 }
  0x7e   : > { %p2662_p6 = pnand %p2661_p13, %p2655_p0 }
  0x80   : > { %2665 = shalt.err (!%p2662_p6)
}
  0x81   : > { %s2666_s13 = scalar_lea.vmem %s3003_s10, 2048  ;;  %s2798_s19 = smov [#allocation2]  }
  0x82   : > { %p2667_p10 = scmp.ne.s32.totalorder %s3003_s10, %s2666_s13  ;;  %s2671_s14 = sshll.u32 %s2798_s19, 4  ;;  %s2672_s14 = int_to_ptr.vmem [resolvable:$false] %s2671_s14 }
  0x83   : > { %s2673_s4 = scalar_lea.vmem %s2672_s14, 4096  ;;  %p2674_p12 = scmp.lt.s32.totalorder %s3003_s10, %s2672_s14 }
  0x84   : > { %p2669_p3 = pnand %p2667_p10, %p2653_p9  ;;  %p2675_p2 = scmp.lt.s32.totalorder %s2673_s4, %s2666_s13 }
  0x86   : > { %p2670_p7 = pneg %p2669_p3  ;;  %p2676_p1 = por %p2675_p2, %p2674_p12 }
  0x88   : > { %p2677_p4 = pnand %p2676_p1, %p2670_p7 }
  0x8a   : > { %2680 = shalt.err (!%p2677_p4)
}
  0x8b   : > { %s3809_s5 = smov 8   ;;  %s3810_s20 = smov 128  }
  0x8c   : > { %2239 = dma.hbm_to_vmem [thread:$0]  (!%p2999_p11), %s2996_s18, 2048, %s3003_s10, %s3010_s17, %s3810_s20, %s3810_s20, %s3809_s5  }
  0x8d   : > { %s273_s26 = scalar_lea.vmem [#allocation5], %s2991_s15  ;;  %s269_s11 = sand.u32 1, %s2789_s24  }
  0x8e   : > { %s281_s16 = sshll.u32 %s273_s26, 4  ;;  %s3045_s7 = scalar_lea.sflag [#allocation6], %s269_s11  ;;  %s3043_s16 = int_to_ptr.vmem [resolvable:$true] %s281_s16 }
  0x8f   : > { %s2681_s13 = scalar_lea.hbm %s3008_s8, 2048  ;;  %s2686_s4 = scalar_lea.hbm %s3758_s2, 4096 }
  0x90   : > { %p2682_p0 = scmp.ne.s32.totalorder %s3008_s8, %s2681_s13  ;;  %p2687_p6 = scmp.lt.u32.totalorder %s3008_s8, %s3758_s2 }
  0x91   : > { %p2688_p10 = scmp.lt.u32.totalorder %s2686_s4, %s2681_s13  ;;  %p2690_p7 = scmp.lt.u32.totalorder %s2681_s13, %s3008_s8 }
  0x92   : > { %p2684_p8 = pnand %p2682_p0, %p2653_p9 }
  0x93   : > { %p2689_p3 = por %p2688_p10, %p2687_p6 }
  0x94   : > { %p2685_p13 = pneg %p2684_p8 }
  0x95   : > { %p2691_p12 = por %p2690_p7, %p2689_p3 }
  0x97   : > { %p2692_p2 = pnand %p2691_p12, %p2685_p13 }
  0x99   : > { %2695 = shalt.err (!%p2692_p2)
}
  0x9a   : > { %s2696_s15 = scalar_lea.vmem %s3043_s16, 2048  ;;  %s2799_s18 = smov [#allocation5]  }
  0x9b   : > { %p2697_p1 = scmp.ne.s32.totalorder %s3043_s16, %s2696_s15  ;;  %s2701_s10 = sshll.u32 %s2799_s18, 4  ;;  %s2702_s10 = int_to_ptr.vmem [resolvable:$false] %s2701_s10 }
  0x9c   : > { %s2703_s0 = scalar_lea.vmem %s2702_s10, 4096  ;;  %p2704_p8 = scmp.lt.s32.totalorder %s3043_s16, %s2702_s10 }
  0x9d   : > { %p2699_p4 = pnand %p2697_p1, %p2653_p9  ;;  %p2705_p6 = scmp.lt.s32.totalorder %s2703_s0, %s2696_s15 }
  0x9f   : > { %p2700_p0 = pneg %p2699_p4  ;;  %p2706_p10 = por %p2705_p6, %p2704_p8 }
  0xa1   : > { %p2707_p3 = pnand %p2706_p10, %p2700_p0 }
  0xa3   : > { %2710 = shalt.err (!%p2707_p3)
}
  0xa4   : > { %2242 = dma.hbm_to_vmem [thread:$0]  (!%p2999_p11), %s3008_s8, 2048, %s3043_s16, %s3045_s7, %s3810_s20, %s3810_s20, %s3809_s5  }
  0xa5   : > { %p3811_p9 = scmp.ne.s32.totalorder %s3798_s29, 0 }
  0xa7   : > { %293 = sbr.rel (%p3811_p9) target bundleno = 1636 (0x664), region = 44 }
  0xae   : > { %s3077_s30 = sand.u32 1, %s2781_s22   ;;  %p3812_p13 = scmp.ne.s32.totalorder %s3796_s27, 0 }
  0xaf   : > { %s1954_s17 = sshll.u32 %s3077_s30, 7  ;;  %s296_s26 = scalar_lea.sflag [#allocation3], %s3077_s30 }
  0xb0   : > { %s3081_s11 = scalar_lea.vmem [#allocation2], %s1954_s17 }
  0xb1   : > { %2756 = dma.done.wait (%p3812_p13), %s296_s26, 2048  }
  0xb2   : > { %2758 = vsyncadd (%p3812_p13), %s296_s26, 4294965248  ;;  %s304_s3 = sand.u32 1, %s2858_s25   ;;  %s3088_s8 = scalar_lea.vmem [#allocation5], %s1954_s17 }
  0xb3   : > { %s305_s29 = scalar_lea.sflag [#allocation6], %s304_s3 }
  0xb4   : > { %2760 = dma.done.wait (%p3812_p13), %s305_s29, 2048  }
  0xb5   : > { %2762 = vsyncadd (%p3812_p13), %s305_s29, 4294965248  ;;  %p3813_p11 = scmp.eq.s32.totalorder %s2858_s25, 0 }
  0xb7   : > { %2764 = dma.done.wait (%p3813_p11), [#allocation6], 2048   ;;  %p3814_p7 = pmov %p3813_p11 }
  0xb9   : > { %2766 = vsyncadd (%p3814_p7), [#allocation6], 4294965248  ;;  %p3815_p12 = pmov %p3814_p7 }
  0xba   : > { %p3816_p2 = pmov %p3814_p7 }
  0xbb   : > { %2768 = dma.done.wait (%p3815_p12), [#allocation9], 6144  }
  0xbc   : > { %2770 = vsyncadd (%p3816_p2), [#allocation9], 4294961152  ;;  %v3103_v0 = vld [vmem:[%s3081_s11] sm:$0xff]  ;;  %v3106_v1 = vld [vmem:[%s3081_s11 + $0x10] sm:$0xff]  ;;  %s1959_s20 = sshll.u32 %s3077_s30, 3  ;;  %s2010_s16 = sshll.u32 %s2858_s25, 7 }
  0xbd   : > { %470 = vmax.xlane.f32.xlu0 %v3103_v0  ;;  %474 = vmax.xlane.f32.xlu1 %v3106_v1  ;;  %v3111_v2 = vld [vmem:[%s3081_s11 + $0x8] sm:$0xff]  ;;  %v3114_v3 = vld [vmem:[%s3081_s11 + $0x18] sm:$0xff]  ;;  %v3117_v4 = vld [vmem:[%s3081_s11 + $0x20] sm:$0xff]  ;;  %s353_s7 = scalar_lea.vmem [#allocation11], %s1959_s20  ;;  %s3712_s4 = scalar_lea.hbm %s3762_s6, %s2010_s16 }
  0xbe   : > { %v3122_v5 = vld [vmem:[%s3081_s11 + $0x28] sm:$0xff]  ;;  %v2295_v6 = vld [vmem:[#allocation7 + $0x40] sm:$0xff]   ;;  %v3125_v8 = vld [vmem:[%s3081_s11 + $0x30] sm:$0xff]  ;;  %s1819_s13 = sshll.u32 %s353_s7, 4  ;;  %s1806_s15 = scalar_lea.sflag [#allocation4], %s3077_s30  ;;  %s3714_s13 = int_to_ptr.vmem [resolvable:$true] %s1819_s13 }
  0xbf   : > { %v2296_v7 = vld [vmem:[#allocation7] sm:$0xff]   ;;  %2016 = vmatprep.subr.bf16.mxu0 %v2295_v6  ;;  %v2297_v9 = vld [vmem:[#allocation7 + $0x48] sm:$0xff]   ;;  %2192 = vmatprep.subr.bf16.mxu1 %v2295_v6  ;;  %v3130_v10 = vld [vmem:[%s3081_s11 + $0x38] sm:$0xff]  ;;  %s2711_s18 = scalar_lea.vmem %s3714_s13, 128  ;;  %s2801_s25 = smov [#allocation11]  }
  0xc0   : > { %2017 = vmatpush3.bf16.msra.mxu0 %v2296_v7  ;;  %v2298_v11 = vld [vmem:[#allocation7 + $0x8] sm:$0xff]   ;;  %2200 = vmatpush3.bf16.msra.mxu1 %v2296_v7  ;;  %v2299_v12 = vld [vmem:[#allocation7 + $0x50] sm:$0xff]   ;;  %v3133_v13 = vld [vmem:[%s3081_s11 + $0x40] sm:$0xff]  ;;  %p2712_p1 = scmp.ne.s32.totalorder %s3714_s13, %s2711_s18  ;;  %s2715_s10 = sshll.u32 %s2801_s25, 4  ;;  %s2716_s10 = int_to_ptr.vmem [resolvable:$false] %s2715_s10 }
  0xc1   : > { %472 = vmax.xlane.f32.xlu0 %v3111_v2  ;;  %476 = vmax.xlane.f32.xlu1 %v3114_v3  ;;  %v3138_v14 = vld [vmem:[%s3081_s11 + $0x48] sm:$0xff]  ;;  %v2300_v15 = vld [vmem:[#allocation7 + $0x10] sm:$0xff]   ;;  %v2301_v16 = vld [vmem:[#allocation7 + $0x58] sm:$0xff]   ;;  %s2717_s0 = scalar_lea.vmem %s2716_s10, 256  ;;  %p2718_p8 = scmp.lt.s32.totalorder %s3714_s13, %s2716_s10 }
  0xc2   : > { %2018 = vmatprep.subr.bf16.mxu0 %v2297_v9  ;;  %2193 = vmatprep.subr.bf16.mxu1 %v2297_v9  ;;  %v3141_v17 = vld [vmem:[%s3081_s11 + $0x50] sm:$0xff]  ;;  %v3146_v18 = vld [vmem:[%s3081_s11 + $0x58] sm:$0xff]  ;;  %v2303_v20 = vld [vmem:[#allocation7 + $0x60] sm:$0xff]   ;;  %p2713_p4 = pnand %p2712_p1, %p2985_p5  ;;  %p2719_p6 = scmp.lt.s32.totalorder %s2717_s0, %s2711_s18 }
  0xc3   : > { %v2302_v19 = vld [vmem:[#allocation7 + $0x18] sm:$0xff]   ;;  %v3149_v21 = vld [vmem:[%s3081_s11 + $0x60] sm:$0xff]  ;;  %v3154_v22 = vld [vmem:[%s3081_s11 + $0x68] sm:$0xff] }
  0xc4   : > { %2019 = vmatpush3.bf16.msra.mxu0 %v2298_v11  ;;  %2201 = vmatpush3.bf16.msra.mxu1 %v2298_v11  ;;  %v2304_v23 = vld [vmem:[#allocation7 + $0x20] sm:$0xff]   ;;  %v2305_v25 = vld [vmem:[#allocation7 + $0x68] sm:$0xff]   ;;  %v3158_v26 = vld [vmem:[%s3081_s11 + $0x70] sm:$0xff]  ;;  %p2714_p0 = pneg %p2713_p4  ;;  %p2720_p10 = por %p2719_p6, %p2718_p8 }
  0xc5   : > { %478 = vmax.xlane.f32.xlu0 %v3117_v4  ;;  %480 = vmax.xlane.f32.xlu1 %v3122_v5  ;;  %v2313_v24 = vld [vmem:[%s3088_s8 + $0x4] ss:$8 sps:$4 sm:$0xff]   ;;  %v3163_v27 = vld [vmem:[%s3081_s11 + $0x78] sm:$0xff]  ;;  %v2307_v30 = vld [vmem:[#allocation7 + $0x70] sm:$0xff]  }
  0xc6   : > { %2020 = vmatprep.subr.bf16.mxu0 %v2299_v12  ;;  %2194 = vmatprep.subr.bf16.mxu1 %v2299_v12  ;;  %v2306_v28 = vld [vmem:[#allocation7 + $0x28] sm:$0xff]   ;;  %v2308_v31 = vld [vmem:[#allocation7 + $0x30] sm:$0xff]   ;;  %v2309_v32 = vld [vmem:[#allocation7 + $0x78] sm:$0xff]   ;;  %p2721_p3 = pnand %p2720_p10, %p2714_p0 }
  0xc7   : > { %886 = vmatprep.mubr.bf16.mxu0 %v2313_v24  ;;  %v2321_v29 = vld [vmem:[%s3088_s8 + $0x44] ss:$8 sps:$4 sm:$0xff]   ;;  %v2310_v33 = vld [vmem:[#allocation7 + $0x38] sm:$0xff]   ;;  %v2311_v34 = vld [vmem:[%s3088_s8] ss:$8 sps:$4 sm:$0xff]  }
  0xc8   : > { %2021 = vmatpush3.bf16.msra.mxu0 %v2300_v15  ;;  %2202 = vmatpush3.bf16.msra.mxu1 %v2300_v15  ;;  %v2319_v35 = vld [vmem:[%s3088_s8 + $0x40] ss:$8 sps:$4 sm:$0xff]   ;;  %v2314_v36 = vld [vmem:[%s3088_s8 + $0x14] ss:$8 sps:$4 sm:$0xff]   ;;  %v2316_v38 = vld [vmem:[%s3088_s8 + $0x10] ss:$8 sps:$4 sm:$0xff]  }
  0xc9   : > { %482 = vmax.xlane.f32.xlu0 %v3125_v8  ;;  %484 = vmax.xlane.f32.xlu1 %v3130_v10  ;;  %v2325_v37 = vld [vmem:[%s3088_s8 + $0x54] ss:$8 sps:$4 sm:$0xff]   ;;  %v2328_v39 = vld [vmem:[%s3088_s8 + $0x50] ss:$8 sps:$4 sm:$0xff]   ;;  %v2317_v40 = vld [vmem:[%s3088_s8 + $0x24] ss:$8 sps:$4 sm:$0xff]  }
  0xca   : > { %2022 = vmatprep.subr.bf16.mxu0 %v2301_v16  ;;  %2195 = vmatprep.subr.bf16.mxu1 %v2301_v16  ;;  %v2329_v41 = vld [vmem:[%s3088_s8 + $0x64] ss:$8 sps:$4 sm:$0xff]   ;;  %v2322_v42 = vld [vmem:[%s3088_s8 + $0x20] ss:$8 sps:$4 sm:$0xff]   ;;  %v2323_v44 = vld [vmem:[%s3088_s8 + $0x34] ss:$8 sps:$4 sm:$0xff]  }
  0xcb   : > { %918 = vmatprep.mubr.bf16.mxu1 %v2321_v29  ;;  %v2331_v43 = vld [vmem:[%s3088_s8 + $0x60] ss:$8 sps:$4 sm:$0xff]   ;;  %v2332_v45 = vld [vmem:[%s3088_s8 + $0x74] ss:$8 sps:$4 sm:$0xff]   ;;  %v2327_v46 = vld [vmem:[%s3088_s8 + $0x30] ss:$8 sps:$4 sm:$0xff]  }
  0xcc   : > { %2023 = vmatpush3.bf16.msra.mxu0 %v2302_v19  ;;  %2203 = vmatpush3.bf16.msra.mxu1 %v2302_v19  ;;  %v2334_v47 = vld [vmem:[%s3088_s8 + $0x70] ss:$8 sps:$4 sm:$0xff]  }
  0xcd   : > { %486 = vmax.xlane.f32.xlu0 %v3133_v13  ;;  %488 = vmax.xlane.f32.xlu1 %v3138_v14 }
  0xce   : > { %2024 = vmatprep.subr.bf16.mxu0 %v2303_v20  ;;  %2196 = vmatprep.subr.bf16.mxu1 %v2303_v20 }
  0xd0   : > { %2025 = vmatpush3.bf16.msra.mxu0 %v2304_v23  ;;  %2204 = vmatpush3.bf16.msra.mxu1 %v2304_v23 }
  0xd1   : > { %490 = vmax.xlane.f32.xlu0 %v3141_v17  ;;  %492 = vmax.xlane.f32.xlu1 %v3146_v18 }
  0xd2   : > { %2026 = vmatprep.subr.bf16.mxu0 %v2305_v25  ;;  %2197 = vmatprep.subr.bf16.mxu1 %v2305_v25 }
  0xd4   : > { %2027 = vmatpush3.bf16.msra.mxu0 %v2306_v28  ;;  %2205 = vmatpush3.bf16.msra.mxu1 %v2306_v28 }
  0xd5   : > { %494 = vmax.xlane.f32.xlu0 %v3149_v21  ;;  %496 = vmax.xlane.f32.xlu1 %v3154_v22 }
  0xd6   : > { %2028 = vmatprep.subr.bf16.mxu0 %v2307_v30  ;;  %2198 = vmatprep.subr.bf16.mxu1 %v2307_v30 }
  0xd8   : > { %2029 = vmatpush3.bf16.msra.mxu0 %v2308_v31  ;;  %2206 = vmatpush3.bf16.msra.mxu1 %v2308_v31 }
  0xd9   : > { %498 = vmax.xlane.f32.xlu0 %v3158_v26  ;;  %500 = vmax.xlane.f32.xlu1 %v3163_v27 }
  0xda   : > { %2030 = vmatprep.subr.bf16.mxu0 %v2309_v32  ;;  %2199 = vmatprep.subr.bf16.mxu1 %v2309_v32 }
  0xdc   : > { %2031 = vmatpush3.bf16.msra.mxu0 %v2310_v33  ;;  %2207 = vmatpush3.bf16.msra.mxu1 %v2310_v33 }
  0xdf   : > { %887 = vmatmul.mubr.bf16.vlgmr.msra.gmra.mrb[0].mxu0 %v2311_v34  ;;  %919 = vmatmul.mubr.bf16.vlgmr.msra.gmra.mrb[0].mxu1 %v2319_v35 }
  0xe0   : > { %894 = vmatprep.mubr.bf16.mxu0 %v2314_v36  ;;  %926 = vmatprep.mubr.bf16.mxu1 %v2325_v37 }
  0xe7   : > { %895 = vmatmul.mubr.bf16.gmra.mrb[4].mxu0 %v2316_v38  ;;  %927 = vmatmul.mubr.bf16.gmra.mrb[4].mxu1 %v2328_v39 }
  0xe8   : > { %902 = vmatprep.mubr.bf16.mxu0 %v2317_v40  ;;  %934 = vmatprep.mubr.bf16.mxu1 %v2329_v41 }
  0xef   : > { %903 = vmatmul.mubr.bf16.gmra.mrb[8].mxu0 %v2322_v42  ;;  %935 = vmatmul.mubr.bf16.gmra.mrb[8].mxu1 %v2331_v43 }
  0xf0   : > { %910 = vmatprep.mubr.bf16.mxu0 %v2323_v44  ;;  %942 = vmatprep.mubr.bf16.mxu1 %v2332_v45 }
  0xf7   : > { %911 = vmatmul.mubr.bf16.gmra.mrb[12].mxu0 %v2327_v46  ;;  %943 = vmatmul.mubr.bf16.gmra.mrb[12].mxu1 %v2334_v47 }
 0x14a   : > { %v471_v48 = vpop.xlane.xlu0 %470  ;;  %v475_v49 = vpop.xlane.xlu1 %474 }
 0x14b   : > { %v3183_v50 = vsub.f32 %v3103_v0, %v471_v48  ;;  %v3186_v51 = vsub.f32 %v3106_v1, %v475_v49  ;;  %v2335_v48 = vld [vmem:[#allocation8] ss:$8 sps:$4 sm:$0xff]   ;;  %v2337_v49 = vld [vmem:[#allocation8 + $0x4] ss:$8 sps:$4 sm:$0xff]  }
 0x14c   : > { %1119 = vmatprep.subr.bf16.mxu1 %v2337_v49 }
 0x14d   : > { %v518_v52 = vmul.f32 1.442695, %v3183_v50  ;;  %v522_v53 = vmul.f32 1.442695, %v3186_v51  ;;  %1120 = vmatpush1.bf16.msra.mxu1 %v2335_v48 }
 0x14e   : > { %v473_v54 = vpop.xlane.xlu0 %472  ;;  %v477_v55 = vpop.xlane.xlu1 %476 }
 0x14f   : > { %2359 = vpow2.f32 %v518_v52  ;;  %v3191_v56 = vsub.f32 %v3111_v2, %v473_v54  ;;  %v3194_v57 = vsub.f32 %v3114_v3, %v477_v55  ;;  %v2340_v52 = vld [vmem:[#allocation8 + $0x14] ss:$8 sps:$4 sm:$0xff]   ;;  %v2343_v54 = vld [vmem:[#allocation8 + $0x24] ss:$8 sps:$4 sm:$0xff]   ;;  %v2341_v55 = vld [vmem:[#allocation8 + $0x20] ss:$8 sps:$4 sm:$0xff]  }
 0x150   : > { %2361 = vpow2.f32 %v522_v53  ;;  %v2338_v53 = vld [vmem:[#allocation8 + $0x10] ss:$8 sps:$4 sm:$0xff]   ;;  %1121 = vmatprep.subr.bf16.mxu1 %v2340_v52 }
 0x151   : > { %v520_v58 = vmul.f32 1.442695, %v3191_v56  ;;  %v524_v59 = vmul.f32 1.442695, %v3194_v57  ;;  %1122 = vmatpush1.bf16.msra.mxu1 %v2338_v53 }
 0x152   : > { %v479_v60 = vpop.xlane.xlu0 %478  ;;  %v481_v61 = vpop.xlane.xlu1 %480  ;;  %1123 = vmatprep.subr.bf16.mxu1 %v2343_v54 }
 0x153   : > { %2363 = vpow2.f32 %v520_v58  ;;  %v3199_v62 = vsub.f32 %v3117_v4, %v479_v60  ;;  %v3202_v63 = vsub.f32 %v3122_v5, %v481_v61  ;;  %v2346_v58 = vld [vmem:[#allocation8 + $0x34] ss:$8 sps:$4 sm:$0xff]   ;;  %v2349_v60 = vld [vmem:[#allocation8 + $0x44] ss:$8 sps:$4 sm:$0xff]   ;;  %v2347_v61 = vld [vmem:[#allocation8 + $0x40] ss:$8 sps:$4 sm:$0xff]  }
 0x154   : > { %2365 = vpow2.f32 %v524_v59  ;;  %v2344_v59 = vld [vmem:[#allocation8 + $0x30] ss:$8 sps:$4 sm:$0xff]  }
 0x155   : > { %3817 = vst [vmem:[#allocation18_spill] sm:$0xff] %v3199_v62  ;;  %3818 = vst [vmem:[#allocation19_spill] sm:$0xff] %v3202_v63  ;;  %v526_v0 = vmul.f32 1.442695, %v3199_v62  ;;  %v528_v1 = vmul.f32 1.442695, %v3202_v63  ;;  %1124 = vmatpush1.bf16.msra.mxu1 %v2341_v55 }
 0x156   : > { %v483_v2 = vpop.xlane.xlu0 %482  ;;  %v485_v3 = vpop.xlane.xlu1 %484  ;;  %1125 = vmatprep.subr.bf16.mxu1 %v2346_v58  ;;  %v442_v63 = vld [vmem:[#allocation10 + $0x20] sm:$0xff]  ;;  %v461_v62 = vld [vmem:[#allocation10 + $0xb8] sm:$0xff] }
 0x157   : > { %2367 = vpow2.f32 %v526_v0  ;;  %v3207_v6 = vsub.f32 %v3125_v8, %v483_v2  ;;  %v3210_v7 = vsub.f32 %v3130_v10, %v485_v3  ;;  %v2352_v0 = vld [vmem:[#allocation8 + $0x54] ss:$8 sps:$4 sm:$0xff]  }
 0x158   : > { %2369 = vpow2.f32 %v528_v1  ;;  %v2350_v1 = vld [vmem:[#allocation8 + $0x50] ss:$8 sps:$4 sm:$0xff]  }
 0x159   : > { %3819 = vst [vmem:[#allocation20_spill] sm:$0xff] %v3207_v6  ;;  %3820 = vst [vmem:[#allocation21_spill] sm:$0xff] %v3210_v7  ;;  %v3212_v9 = vpop.eup %2359  ;;  %v530_v4 = vmul.f32 1.442695, %v3207_v6  ;;  %v532_v5 = vmul.f32 1.442695, %v3210_v7  ;;  %1126 = vmatpush1.bf16.msra.mxu1 %v2344_v59 }
 0x15a   : > { %550 = vadd.xlane.f32.xlu0 %v3212_v9  ;;  %v487_v11 = vpop.xlane.xlu0 %486  ;;  %v489_v12 = vpop.xlane.xlu1 %488  ;;  %1127 = vmatprep.subr.bf16.mxu1 %v2349_v60  ;;  %v441_v6 = vld [vmem:[#allocation10 + $0x18] sm:$0xff] }
 0x15b   : > { %v3217_v15 = vpop.eup %2361  ;;  %2371 = vpow2.f32 %v530_v4  ;;  %v3220_v8 = vsub.f32 %v3133_v13, %v487_v11  ;;  %v3223_v10 = vsub.f32 %v3138_v14, %v489_v12 }
 0x15c   : > { %2373 = vpow2.f32 %v532_v5 }
 0x15d   : > { %3821 = vst [vmem:[#allocation22_spill] sm:$0xff] %v3220_v8  ;;  %3822 = vst [vmem:[#allocation23_spill] sm:$0xff] %v3223_v10  ;;  %v3225_v16 = vpop.eup %2363  ;;  %v534_v19 = vmul.f32 1.442695, %v3220_v8  ;;  %v536_v20 = vmul.f32 1.442695, %v3223_v10  ;;  %1128 = vmatpush1.bf16.msra.mxu1 %v2347_v61 }
 0x15e   : > { %554 = vadd.xlane.f32.xlu0 %v3217_v15  ;;  %552 = vadd.xlane.f32.xlu1 %v3225_v16  ;;  %v491_v23 = vpop.xlane.xlu0 %490  ;;  %v493_v24 = vpop.xlane.xlu1 %492 }
 0x15f   : > { %v3231_v25 = vpop.eup %2365  ;;  %2375 = vpow2.f32 %v534_v19  ;;  %v3234_v13 = vsub.f32 %v3141_v17, %v491_v23  ;;  %v3237_v14 = vsub.f32 %v3146_v18, %v493_v24  ;;  %1129 = vmatprep.subr.bf16.mxu1 %v2352_v0 }
 0x160   : > { %2377 = vpow2.f32 %v536_v20 }
 0x161   : > { %3823 = vst [vmem:[#allocation24_spill] sm:$0xff] %v3234_v13  ;;  %3824 = vst [vmem:[#allocation25_spill] sm:$0xff] %v3237_v14  ;;  %v3239_v28 = vpop.eup %2367  ;;  %v538_v29 = vmul.f32 1.442695, %v3234_v13  ;;  %v540_v30 = vmul.f32 1.442695, %v3237_v14  ;;  %1130 = vmatpush1.bf16.msra.mxu1 %v2350_v1 }
 0x162   : > { %556 = vadd.xlane.f32.xlu1 %v3231_v25  ;;  %558 = vadd.xlane.f32.xlu0 %v3239_v28  ;;  %v495_v31 = vpop.xlane.xlu0 %494  ;;  %v497_v32 = vpop.xlane.xlu1 %496 }
 0x163   : > { %v3245_v33 = vpop.eup %2369  ;;  %2379 = vpow2.f32 %v538_v29  ;;  %v3248_v17 = vsub.f32 %v3149_v21, %v495_v31  ;;  %v3251_v18 = vsub.f32 %v3154_v22, %v497_v32 }
 0x164   : > { %2381 = vpow2.f32 %v540_v30 }
 0x165   : > { %3825 = vst [vmem:[#allocation26_spill] sm:$0xff] %v3248_v17  ;;  %3826 = vst [vmem:[#allocation27_spill] sm:$0xff] %v3251_v18  ;;  %v3253_v34 = vpop.eup %2371  ;;  %v542_v35 = vmul.f32 1.442695, %v3248_v17  ;;  %v544_v36 = vmul.f32 1.442695, %v3251_v18 }
 0x166   : > { %560 = vadd.xlane.f32.xlu1 %v3245_v33  ;;  %562 = vadd.xlane.f32.xlu0 %v3253_v34  ;;  %v499_v37 = vpop.xlane.xlu0 %498  ;;  %v501_v38 = vpop.xlane.xlu1 %500 }
 0x167   : > { %v3259_v39 = vpop.eup %2373  ;;  %2383 = vpow2.f32 %v542_v35  ;;  %v3262_v21 = vsub.f32 %v3158_v26, %v499_v37  ;;  %v3265_v22 = vsub.f32 %v3163_v27, %v501_v38 }
 0x168   : > { %2385 = vpow2.f32 %v544_v36 }
 0x169   : > { %3827 = vst [vmem:[#allocation28_spill] sm:$0xff] %v3262_v21  ;;  %3828 = vst [vmem:[#allocation29_spill] sm:$0xff] %v3265_v22  ;;  %v3267_v40 = vpop.eup %2375  ;;  %v546_v41 = vmul.f32 1.442695, %v3262_v21  ;;  %v548_v42 = vmul.f32 1.442695, %v3265_v22 }
 0x16a   : > { %564 = vadd.xlane.f32.xlu1 %v3259_v39  ;;  %566 = vadd.xlane.f32.xlu0 %v3267_v40  ;;  %v3273_v43 = vpop.eup %2377 }
 0x16b   : > { %2387 = vpow2.f32 %v546_v41 }
 0x16c   : > { %2389 = vpow2.f32 %v548_v42 }
 0x16d   : > { %v3275_v44 = vpop.eup %2379 }
 0x16e   : > { %568 = vadd.xlane.f32.xlu1 %v3273_v43  ;;  %570 = vadd.xlane.f32.xlu0 %v3275_v44  ;;  %v3279_v26 = vpop.eup %2381 }
 0x171   : > { %v3281_v27 = vpop.eup %2383 }
 0x172   : > { %572 = vadd.xlane.f32.xlu1 %v3279_v26  ;;  %574 = vadd.xlane.f32.xlu0 %v3281_v27  ;;  %v3285_v45 = vpop.eup %2385 }
 0x175   : > { %v3287_v46 = vpop.eup %2387 }
 0x176   : > { %576 = vadd.xlane.f32.xlu1 %v3285_v45  ;;  %578 = vadd.xlane.f32.xlu0 %v3287_v46  ;;  %v3291_v47 = vpop.eup %2389 }
 0x17a   : > { %580 = vadd.xlane.f32.xlu1 %v3291_v47 }
 0x1b2   : > { %v2032_v2 = vpop.f32.mrb[0].mxu0  ;;  %v2056_v3 = vpop.f32.mrb[0].mxu1 }
 0x1b3   : > { %v2033_v4 = vpop.f32.mrb[1].mxu0  ;;  %v2057_v5 = vpop.f32.mrb[1].mxu1 }
 0x1b4   : > { %v3294_v11 = vadd.f32 %v2033_v4, %v2032_v2  ;;  %v2035_v12 = vpop.f32.mrb[2].mxu0  ;;  %v3296_v19 = vadd.f32 %v2057_v5, %v2056_v3  ;;  %v2059_v20 = vpop.f32.mrb[2].mxu1 }
 0x1b5   : > { %v2036_v23 = vpop.f32.mrb[3].mxu0  ;;  %v2060_v24 = vpop.f32.mrb[3].mxu1 }
 0x1b6   : > { %v3298_v29 = vadd.f32 %v2036_v23, %v2035_v12  ;;  %v3300_v30 = vadd.f32 %v2060_v24, %v2059_v20 }
 0x1ba   : > { %v2038_v31 = vpop.f32.mrb[4].mxu0  ;;  %v2062_v32 = vpop.f32.mrb[4].mxu1 }
 0x1bb   : > { %v2039_v35 = vpop.f32.mrb[5].mxu0  ;;  %v2063_v36 = vpop.f32.mrb[5].mxu1 }
 0x1bc   : > { %v3302_v37 = vadd.f32 %v2039_v35, %v2038_v31  ;;  %v2041_v38 = vpop.f32.mrb[6].mxu0  ;;  %v3304_v41 = vadd.f32 %v2063_v36, %v2062_v32  ;;  %v2065_v42 = vpop.f32.mrb[6].mxu1 }
 0x1bd   : > { %v2042_v48 = vpop.f32.mrb[7].mxu0  ;;  %v2066_v49 = vpop.f32.mrb[7].mxu1 }
 0x1be   : > { %v3306_v52 = vadd.f32 %v2042_v48, %v2041_v38  ;;  %v3308_v53 = vadd.f32 %v2066_v49, %v2065_v42 }
 0x1c2   : > { %v2044_v54 = vpop.f32.mrb[8].mxu0  ;;  %v2068_v55 = vpop.f32.mrb[8].mxu1 }
 0x1c3   : > { %v2045_v58 = vpop.f32.mrb[9].mxu0  ;;  %v2069_v59 = vpop.f32.mrb[9].mxu1 }
 0x1c4   : > { %v3310_v60 = vadd.f32 %v2045_v58, %v2044_v54  ;;  %v2047_v61 = vpop.f32.mrb[10].mxu0  ;;  %v3312_v0 = vadd.f32 %v2069_v59, %v2068_v55  ;;  %v2071_v1 = vpop.f32.mrb[10].mxu1 }
 0x1c5   : > { %v2048_v2 = vpop.f32.mrb[11].mxu0  ;;  %v2072_v3 = vpop.f32.mrb[11].mxu1 }
 0x1c6   : > { %v3314_v4 = vadd.f32 %v2048_v2, %v2047_v61  ;;  %v3316_v5 = vadd.f32 %v2072_v3, %v2071_v1 }
 0x1ca   : > { %v2050_v12 = vpop.f32.mrb[12].mxu0  ;;  %v2074_v20 = vpop.f32.mrb[12].mxu1 }
 0x1cb   : > { %v2051_v23 = vpop.f32.mrb[13].mxu0  ;;  %v2075_v24 = vpop.f32.mrb[13].mxu1 }
 0x1cc   : > { %v3318_v31 = vadd.f32 %v2051_v23, %v2050_v12  ;;  %v2053_v32 = vpop.f32.mrb[14].mxu0  ;;  %v3320_v35 = vadd.f32 %v2075_v24, %v2074_v20  ;;  %v2077_v36 = vpop.f32.mrb[14].mxu1 }
 0x1cd   : > { %v2054_v38 = vpop.f32.mrb[15].mxu0  ;;  %v2078_v42 = vpop.f32.mrb[15].mxu1 }
 0x1ce   : > { %v3322_v48 = vadd.f32 %v2054_v38, %v2053_v32  ;;  %v3324_v49 = vadd.f32 %v2078_v42, %v2077_v36 }
 0x1e7   : > { %v3326_v54 = vpop.xlane.xlu0 %550 }
 0x1e8   : > { %2391 = vrcp.f32 %v3326_v54 }
 0x1eb   : > { %v3329_v55 = vpop.xlane.xlu1 %552  ;;  %v3331_v58 = vpop.xlane.xlu0 %554 }
 0x1ec   : > { %2393 = vrcp.f32 %v3329_v55 }
 0x1ed   : > { %2395 = vrcp.f32 %v3331_v58 }
 0x1ef   : > { %v3335_v59 = vpop.xlane.xlu1 %556  ;;  %v3337_v61 = vpop.xlane.xlu0 %558 }
 0x1f0   : > { %2397 = vrcp.f32 %v3335_v59 }
 0x1f1   : > { %2399 = vrcp.f32 %v3337_v61 }
 0x1f2   : > { %v2392_v1 = vpop.eup %2391 }
 0x1f3   : > { %v3341_v2 = vpop.xlane.xlu1 %560  ;;  %v3343_v3 = vpop.xlane.xlu0 %562  ;;  %v3346_v12 = vmul.f32 %v2392_v1, %v3212_v9 }
 0x1f4   : > { %2401 = vrcp.f32 %v3341_v2 }
 0x1f5   : > { %v951_v20 = vmul.f32 %v3294_v11, %v3346_v12  ;;  %2403 = vrcp.f32 %v3343_v3 }
 0x1f6   : > { %v2394_v23 = vpop.eup %2393 }
 0x1f7   : > { %v3352_v24 = vpop.xlane.xlu1 %564  ;;  %967 = vadd.xlane.f32.xlu0 %v951_v20  ;;  %v3354_v32 = vpop.xlane.xlu0 %566  ;;  %v3357_v36 = vmul.f32 %v2394_v23, %v3225_v16 }
 0x1f8   : > { %3829 = vst [vmem:[#allocation30_spill] sm:$0xff] %v3354_v32  ;;  %v2396_v38 = vpop.eup %2395  ;;  %2405 = vrcp.f32 %v3352_v24 }
 0x1f9   : > { %v952_v9 = vmul.f32 %v3298_v29, %v3357_v36  ;;  %v3363_v42 = vmul.f32 %v2396_v38, %v3217_v15  ;;  %2407 = vrcp.f32 %v3354_v32  ;;  %v444_v32 = vld [vmem:[#allocation10 + $0x30] sm:$0xff] }
 0x1fa   : > { %v2398_v1 = vpop.eup %2397 }
 0x1fb   : > { %969 = vadd.xlane.f32.xlu1 %v952_v9  ;;  %v3366_v22 = vpop.xlane.xlu1 %568  ;;  %v953_v20 = vmul.f32 %v3302_v37, %v3363_v42  ;;  %v3370_v16 = vpop.xlane.xlu0 %570  ;;  %v3373_v23 = vmul.f32 %v2398_v1, %v3231_v25 }
 0x1fc   : > { %3830 = vst [vmem:[#allocation31_spill] sm:$0xff] %v3366_v22  ;;  %3831 = vst [vmem:[#allocation32_spill] sm:$0xff] %v3370_v16  ;;  %v2400_v21 = vpop.eup %2399  ;;  %2409 = vrcp.f32 %v3366_v22  ;;  %v460_v22 = vld [vmem:[#allocation10 + $0xb0] sm:$0xff] }
 0x1fd   : > { %971 = vadd.xlane.f32.xlu0 %v953_v20  ;;  %v954_v15 = vmul.f32 %v3306_v52, %v3373_v23  ;;  %v3379_v38 = vmul.f32 %v2400_v21, %v3239_v28  ;;  %2411 = vrcp.f32 %v3370_v16  ;;  %v458_v16 = vld [vmem:[#allocation10 + $0xa0] sm:$0xff] }
 0x1fe   : > { %v2402_v9 = vpop.eup %2401 }
 0x1ff   : > { %973 = vadd.xlane.f32.xlu1 %v954_v15  ;;  %v3382_v18 = vpop.xlane.xlu1 %572  ;;  %v955_v25 = vmul.f32 %v3310_v60, %v3379_v38  ;;  %v3386_v1 = vpop.xlane.xlu0 %574  ;;  %v3389_v17 = vmul.f32 %v2402_v9, %v3245_v33 }
 0x200   : > { %3832 = vst [vmem:[#allocation33_spill] sm:$0xff] %v3382_v18  ;;  %3833 = vst [vmem:[#allocation34_spill] sm:$0xff] %v3386_v1  ;;  %v2404_v20 = vpop.eup %2403  ;;  %2413 = vrcp.f32 %v3382_v18  ;;  %v440_v18 = vld [vmem:[#allocation10 + $0x10] sm:$0xff] }
 0x201   : > { %975 = vadd.xlane.f32.xlu0 %v955_v25  ;;  %v956_v28 = vmul.f32 %v3314_v4, %v3389_v17  ;;  %v3395_v21 = vmul.f32 %v2404_v20, %v3253_v34  ;;  %2415 = vrcp.f32 %v3386_v1  ;;  %v2358_v1 = vld [vmem:[#allocation8 + $0x74] ss:$8 sps:$4 sm:$0xff]  }
 0x202   : > { %v2406_v15 = vpop.eup %2405 }
 0x203   : > { %977 = vadd.xlane.f32.xlu1 %v956_v28  ;;  %v3398_v14 = vpop.xlane.xlu1 %576  ;;  %v957_v33 = vmul.f32 %v3318_v31, %v3395_v21  ;;  %v3402_v9 = vpop.xlane.xlu0 %578  ;;  %v3405_v13 = vmul.f32 %v2406_v15, %v3259_v39 }
 0x204   : > { %3834 = vst [vmem:[#allocation35_spill] sm:$0xff] %v3398_v14  ;;  %3835 = vst [vmem:[#allocation36_spill] sm:$0xff] %v3402_v9  ;;  %v2408_v25 = vpop.eup %2407  ;;  %2417 = vrcp.f32 %v3398_v14  ;;  %v2353_v14 = vld [vmem:[#allocation8 + $0x60] ss:$8 sps:$4 sm:$0xff]  }
 0x205   : > { %979 = vadd.xlane.f32.xlu0 %v957_v33  ;;  %v958_v34 = vmul.f32 %v3322_v48, %v3405_v13  ;;  %v3411_v20 = vmul.f32 %v2408_v25, %v3267_v40  ;;  %2419 = vrcp.f32 %v3402_v9  ;;  %v2355_v33 = vld [vmem:[#allocation8 + $0x64] ss:$8 sps:$4 sm:$0xff]  }
 0x206   : > { %v2410_v28 = vpop.eup %2409  ;;  %1131 = vmatprep.subr.bf16.mxu1 %v2355_v33 }
 0x207   : > { %981 = vadd.xlane.f32.xlu1 %v958_v34  ;;  %v3414_v10 = vpop.xlane.xlu1 %580  ;;  %v959_v39 = vmul.f32 %v3296_v19, %v3411_v20  ;;  %v3419_v15 = vmul.f32 %v2410_v28, %v3273_v43  ;;  %v2412_v8 = vpop.eup %2411  ;;  %1132 = vmatpush1.bf16.msra.mxu1 %v2353_v14 }
 0x208   : > { %3836 = vst [vmem:[#allocation37_spill] sm:$0xff] %v3414_v10  ;;  %2421 = vrcp.f32 %v3414_v10  ;;  %v3425_v25 = vmul.f32 %v2412_v8, %v3275_v44  ;;  %v2356_v8 = vld [vmem:[#allocation8 + $0x70] ss:$8 sps:$4 sm:$0xff]   ;;  %1133 = vmatprep.subr.bf16.mxu1 %v2358_v1 }
 0x209   : > { %983 = vadd.xlane.f32.xlu0 %v959_v39  ;;  %v960_v40 = vmul.f32 %v3300_v30, %v3419_v15 }
 0x20a   : > { %v2414_v34 = vpop.eup %2413  ;;  %v961_v43 = vmul.f32 %v3304_v41, %v3425_v25 }
 0x20b   : > { %985 = vadd.xlane.f32.xlu1 %v960_v40  ;;  %v3430_v28 = vmul.f32 %v2414_v34, %v3279_v26  ;;  %v2416_v9 = vpop.eup %2415  ;;  %1134 = vmatpush1.bf16.msra.mxu1 %v2356_v8  ;;  %v455_v8 = vld [vmem:[#allocation10 + $0x88] sm:$0xff] }
 0x20c   : > { %v3435_v10 = vmul.f32 %v2416_v9, %v3281_v27  ;;  %v3782_v27 = vmov 0  }
 0x20d   : > { %987 = vadd.xlane.f32.xlu0 %v961_v43  ;;  %v962_v39 = vmul.f32 %v3308_v53, %v3430_v28  ;;  %1151 = vmatprep.mubr.bf16.mxu1 %v3782_v27  ;;  %v457_v27 = vld [vmem:[#allocation10 + $0x98] sm:$0xff] }
 0x20e   : > { %v2418_v44 = vpop.eup %2417  ;;  %v963_v14 = vmul.f32 %v3312_v0, %v3435_v10 }
 0x20f   : > { %989 = vadd.xlane.f32.xlu1 %v962_v39  ;;  %v3440_v33 = vmul.f32 %v2418_v44, %v3285_v45  ;;  %v2420_v26 = vpop.eup %2419  ;;  %v454_v39 = vld [vmem:[#allocation10 + $0x80] sm:$0xff] }
 0x210   : > { %v3445_v34 = vmul.f32 %v2420_v26, %v3287_v46  ;;  %v438_v46 = vld [vmem:[#allocation10] sm:$0xff]  ;;  %v2160_v44 = vpack.c.bf16 %v455_v8, %v454_v39  ;;  %v456_v26 = vld [vmem:[#allocation10 + $0x90] sm:$0xff]  ;;  %v2172_v8 = vpack.c.bf16 %v461_v62, %v460_v22  ;;  %v467_v62 = vld [vmem:[#allocation10 + $0xe8] sm:$0xff] }
 0x211   : > { %991 = vadd.xlane.f32.xlu0 %v963_v14  ;;  %v964_v40 = vmul.f32 %v3316_v5, %v3440_v33  ;;  %v439_v14 = vld [vmem:[#allocation10 + $0x8] sm:$0xff] }
 0x212   : > { %v2422_v1 = vpop.eup %2421  ;;  %v965_v9 = vmul.f32 %v3320_v35, %v3445_v34  ;;  %v2162_v7 = vpack.c.bf16 %v439_v14, %v438_v46  ;;  %2161 = vmatprep.subr.bf16.mxu0 %v2160_v44  ;;  %v445_v46 = vld [vmem:[#allocation10 + $0x38] sm:$0xff]  ;;  %v463_v14 = vld [vmem:[#allocation10 + $0xc8] sm:$0xff] }
 0x213   : > { %993 = vadd.xlane.f32.xlu1 %v964_v40  ;;  %v3451_v45 = vmul.f32 %v2422_v1, %v3291_v47  ;;  %v2164_v40 = vpack.c.bf16 %v457_v27, %v456_v26  ;;  %v459_v47 = vld [vmem:[#allocation10 + $0xa8] sm:$0xff]  ;;  %v2166_v1 = vpack.c.bf16 %v441_v6, %v440_v18  ;;  %v462_v27 = vld [vmem:[#allocation10 + $0xc0] sm:$0xff]  ;;  %v2174_v26 = vpack.c.bf16 %v445_v46, %v444_v32  ;;  %v464_v18 = vld [vmem:[#allocation10 + $0xd0] sm:$0xff] }
 0x214   : > { %2163 = vmatpush3.bf16.msra.mxu0 %v2162_v7  ;;  %v2176_v44 = vpack.c.bf16 %v463_v14, %v462_v27  ;;  %v446_v7 = vld [vmem:[#allocation10 + $0x40] sm:$0xff]  ;;  %v447_v6 = vld [vmem:[#allocation10 + $0x48] sm:$0xff]  ;;  %v469_v46 = vld [vmem:[#allocation10 + $0xf8] sm:$0xff] }
 0x215   : > { %995 = vadd.xlane.f32.xlu0 %v965_v9  ;;  %v966_v43 = vmul.f32 %v3324_v49, %v3451_v45  ;;  %2165 = vmatprep.subr.bf16.mxu0 %v2164_v40  ;;  %v2168_v9 = vpack.c.bf16 %v459_v47, %v458_v16  ;;  %v465_v16 = vld [vmem:[#allocation10 + $0xd8] sm:$0xff]  ;;  %v2178_v40 = vpack.c.bf16 %v447_v6, %v446_v7  ;;  %v451_v32 = vld [vmem:[#allocation10 + $0x68] sm:$0xff] }
 0x216   : > { %v2180_v47 = vpack.c.bf16 %v465_v16, %v464_v18  ;;  %v453_v7 = vld [vmem:[#allocation10 + $0x78] sm:$0xff] }
 0x217   : > { %997 = vadd.xlane.f32.xlu1 %v966_v43  ;;  %v443_v43 = vld [vmem:[#allocation10 + $0x28] sm:$0xff] }
 0x218   : > { %2167 = vmatpush3.bf16.msra.mxu0 %v2166_v1  ;;  %v2170_v39 = vpack.c.bf16 %v443_v43, %v442_v63  ;;  %v448_v1 = vld [vmem:[#allocation10 + $0x50] sm:$0xff]  ;;  %v449_v63 = vld [vmem:[#allocation10 + $0x58] sm:$0xff] }
 0x219   : > { %2169 = vmatprep.subr.bf16.mxu0 %v2168_v9  ;;  %v466_v9 = vld [vmem:[#allocation10 + $0xe0] sm:$0xff]  ;;  %v2182_v22 = vpack.c.bf16 %v449_v63, %v448_v1 }
 0x21a   : > { %v2184_v43 = vpack.c.bf16 %v467_v62, %v466_v9 }
 0x21c   : > { %2171 = vmatpush3.bf16.msra.mxu0 %v2170_v39  ;;  %v450_v39 = vld [vmem:[#allocation10 + $0x60] sm:$0xff] }
 0x21d   : > { %2173 = vmatprep.subr.bf16.mxu0 %v2172_v8  ;;  %v468_v8 = vld [vmem:[#allocation10 + $0xf0] sm:$0xff]  ;;  %v2186_v27 = vpack.c.bf16 %v451_v32, %v450_v39  ;;  %v3837_v39 = vmov 0  }
 0x21e   : > { %v2188_v14 = vpack.c.bf16 %v469_v46, %v468_v8 }
 0x220   : > { %2175 = vmatpush3.bf16.msra.mxu0 %v2174_v26  ;;  %v452_v26 = vld [vmem:[#allocation10 + $0x70] sm:$0xff] }
 0x221   : > { %2177 = vmatprep.subr.bf16.mxu0 %v2176_v44  ;;  %v2190_v44 = vpack.c.bf16 %v453_v7, %v452_v26 }
 0x224   : > { %2179 = vmatpush3.bf16.msra.mxu0 %v2178_v40 }
 0x225   : > { %2181 = vmatprep.subr.bf16.mxu0 %v2180_v47 }
 0x228   : > { %2183 = vmatpush3.bf16.msra.mxu0 %v2182_v22 }
 0x229   : > { %2185 = vmatprep.subr.bf16.mxu0 %v2184_v43 }
 0x22c   : > { %2187 = vmatpush3.bf16.msra.mxu0 %v2186_v27 }
 0x22d   : > { %2189 = vmatprep.subr.bf16.mxu0 %v2188_v14 }
 0x230   : > { %2191 = vmatpush3.bf16.msra.mxu0 %v2190_v44 }
 0x284   : > { %v968_v6 = vpop.xlane.xlu0 %967 }
 0x285   : > { %v999_v18 = vsub.f32 %v3294_v11, %v968_v6 }
 0x287   : > { %v1015_v47 = vmul.f32 %v999_v18, %v3346_v12 }
 0x288   : > { %v970_v16 = vpop.xlane.xlu1 %969 }
 0x289   : > { %v1000_v40 = vsub.f32 %v3298_v29, %v970_v16 }
 0x28a   : > { %v972_v63 = vpop.xlane.xlu0 %971 }
 0x28b   : > { %v1016_v1 = vmul.f32 %v1000_v40, %v3357_v36  ;;  %v1001_v43 = vsub.f32 %v3302_v37, %v972_v63 }
 0x28c   : > { %v974_v9 = vpop.xlane.xlu1 %973 }
 0x28d   : > { %v1031_v62 = vpack.c.bf16 %v1016_v1, %v1015_v47  ;;  %v1002_v22 = vsub.f32 %v3306_v52, %v974_v9  ;;  %v1017_v8 = vmul.f32 %v1001_v43, %v3363_v42 }
 0x28e   : > { %v976_v29 = vpop.xlane.xlu0 %975 }
 0x28f   : > { %1152 = vmatmul.mubr.bf16.vlgmr.msra.gmra.mrb[16].mxu1 %v1031_v62  ;;  %v1018_v32 = vmul.f32 %v1002_v22, %v3373_v23  ;;  %v1003_v14 = vsub.f32 %v3310_v60, %v976_v29 }
 0x290   : > { %1161 = vmatprep.mubr.bf16.mxu1 %v3837_v39  ;;  %v978_v11 = vpop.xlane.xlu1 %977 }
 0x291   : > { %v1004_v46 = vsub.f32 %v3314_v4, %v978_v11  ;;  %v1032_v27 = vpack.c.bf16 %v1018_v32, %v1017_v8  ;;  %v1019_v26 = vmul.f32 %v1003_v14, %v3379_v38 }
 0x292   : > { %v980_v7 = vpop.xlane.xlu0 %979 }
 0x293   : > { %v1020_v52 = vmul.f32 %v1004_v46, %v3389_v17  ;;  %v1005_v18 = vsub.f32 %v3318_v31, %v980_v7 }
 0x294   : > { %v982_v37 = vpop.xlane.xlu1 %981 }
 0x295   : > { %v1006_v44 = vsub.f32 %v3322_v48, %v982_v37  ;;  %v1033_v6 = vpack.c.bf16 %v1020_v52, %v1019_v26  ;;  %v1021_v16 = vmul.f32 %v1005_v18, %v3395_v21 }
 0x296   : > { %v984_v40 = vpop.xlane.xlu0 %983 }
 0x297   : > { %1162 = vmatmul.mubr.bf16.gmra.mrb[20].mxu1 %v1032_v27  ;;  %v1022_v4 = vmul.f32 %v1006_v44, %v3405_v13  ;;  %v1007_v63 = vsub.f32 %v3296_v19, %v984_v40 }
 0x298   : > { %1171 = vmatprep.mubr.bf16.mxu1 %v3837_v39  ;;  %v986_v60 = vpop.xlane.xlu1 %985 }
 0x299   : > { %v1008_v47 = vsub.f32 %v3300_v30, %v986_v60  ;;  %v1034_v1 = vpack.c.bf16 %v1022_v4, %v1021_v16  ;;  %v1023_v9 = vmul.f32 %v1007_v63, %v3411_v20 }
 0x29a   : > { %v988_v62 = vpop.xlane.xlu0 %987 }
 0x29b   : > { %v1024_v48 = vmul.f32 %v1008_v47, %v3419_v15  ;;  %v1009_v32 = vsub.f32 %v3304_v41, %v988_v62 }
 0x29c   : > { %v990_v31 = vpop.xlane.xlu1 %989 }
 0x29d   : > { %v1010_v22 = vsub.f32 %v3308_v53, %v990_v31  ;;  %v1035_v43 = vpack.c.bf16 %v1024_v48, %v1023_v9  ;;  %v1025_v11 = vmul.f32 %v1009_v32, %v3425_v25 }
 0x29e   : > { %v992_v8 = vpop.xlane.xlu0 %991 }
 0x29f   : > { %1172 = vmatmul.mubr.bf16.gmra.mrb[24].mxu1 %v1033_v6  ;;  %v1026_v30 = vmul.f32 %v1010_v22, %v3430_v28  ;;  %v1011_v27 = vsub.f32 %v3312_v0, %v992_v8 }
 0x2a0   : > { %1181 = vmatprep.mubr.bf16.mxu1 %v3837_v39  ;;  %v994_v19 = vpop.xlane.xlu1 %993 }
 0x2a1   : > { %v1012_v29 = vsub.f32 %v3316_v5, %v994_v19  ;;  %v1036_v46 = vpack.c.bf16 %v1026_v30, %v1025_v11  ;;  %v1027_v14 = vmul.f32 %v1011_v27, %v3435_v10 }
 0x2a2   : > { %v996_v52 = vpop.xlane.xlu0 %995 }
 0x2a3   : > { %v1028_v53 = vmul.f32 %v1012_v29, %v3440_v33  ;;  %v1013_v7 = vsub.f32 %v3320_v35, %v996_v52 }
 0x2a4   : > { %v998_v41 = vpop.xlane.xlu1 %997 }
 0x2a5   : > { %v1014_v37 = vsub.f32 %v3324_v49, %v998_v41  ;;  %v1037_v26 = vpack.c.bf16 %v1028_v53, %v1027_v14  ;;  %v1029_v0 = vmul.f32 %v1013_v7, %v3445_v34 }
 0x2a7   : > { %1182 = vmatmul.mubr.bf16.gmra.mrb[28].mxu1 %v1034_v1  ;;  %v1030_v5 = vmul.f32 %v1014_v37, %v3451_v45 }
 0x2a8   : > { %1191 = vmatprep.mubr.bf16.mxu1 %v3837_v39 }
 0x2a9   : > { %v1038_v44 = vpack.c.bf16 %v1030_v5, %v1029_v0 }
 0x2af   : > { %1192 = vmatmul.mubr.bf16.gmra.mrb[32].mxu1 %v1035_v43 }
 0x2b0   : > { %1201 = vmatprep.mubr.bf16.mxu1 %v3837_v39 }
 0x2b7   : > { %1202 = vmatmul.mubr.bf16.gmra.mrb[36].mxu1 %v1036_v46 }
 0x2b8   : > { %1211 = vmatprep.mubr.bf16.mxu1 %v3837_v39 }
 0x2bf   : > { %1212 = vmatmul.mubr.bf16.gmra.mrb[40].mxu1 %v1037_v26 }
 0x2c0   : > { %1221 = vmatprep.mubr.bf16.mxu1 %v3837_v39 }
 0x2c7   : > { %1222 = vmatmul.mubr.bf16.gmra.mrb[44].mxu1 %v1038_v44 }
 0x362   : > { %v1153_v6 = vpop.f32.mrb[16].mxu1 }
 0x363   : > { %v1232_v18 = vmul.f32 %v1153_v6, %v1153_v6  ;;  %v1155_v4 = vpop.f32.mrb[17].mxu1 }
 0x364   : > { %v1233_v60 = vmul.f32 %v1155_v4, %v1155_v4  ;;  %v1157_v16 = vpop.f32.mrb[18].mxu1  ;;  %1408 = vmatprep.mubr.f32.mxu0 %v1155_v4 }
 0x365   : > { %v1234_v40 = vmul.f32 %v1157_v16, %v1157_v16  ;;  %v1159_v49 = vpop.f32.mrb[19].mxu1  ;;  %1409 = vmatmul.mubr.f32.vlgmr.msra.gmra.mrb[16].mxu0 %v1153_v6 }
 0x366   : > { %v1235_v47 = vmul.f32 %v1159_v49, %v1159_v49  ;;  %1413 = vmatprep.mubr.f32.mxu0 %v1159_v49  ;;  %v1264_v35 = vadd.f32 %v1233_v60, %v1232_v18 }
 0x368   : > { %1265 = vadd.xlane.f32.xlu0 %v1264_v35  ;;  %v1267_v39 = vadd.f32 %v1235_v47, %v1234_v40 }
 0x369   : > { %1414 = vmatmul.mubr.f32.gmra.mrb[18].mxu0 %v1157_v16 }
 0x36a   : > { %1268 = vadd.xlane.f32.xlu1 %v1267_v39  ;;  %v1163_v1 = vpop.f32.mrb[20].mxu1 }
 0x36b   : > { %v1236_v63 = vmul.f32 %v1163_v1, %v1163_v1  ;;  %v1165_v48 = vpop.f32.mrb[21].mxu1 }
 0x36c   : > { %v1237_v31 = vmul.f32 %v1165_v48, %v1165_v48  ;;  %v1167_v9 = vpop.f32.mrb[22].mxu1  ;;  %1418 = vmatprep.mubr.f32.mxu0 %v1165_v48 }
 0x36d   : > { %v1238_v62 = vmul.f32 %v1167_v9, %v1167_v9  ;;  %v1169_v22 = vpop.f32.mrb[23].mxu1  ;;  %1419 = vmatmul.mubr.f32.gmra.mrb[20].mxu0 %v1163_v1 }
 0x36e   : > { %v1239_v43 = vmul.f32 %v1169_v22, %v1169_v22  ;;  %1423 = vmatprep.mubr.f32.mxu0 %v1169_v22  ;;  %v1270_v32 = vadd.f32 %v1237_v31, %v1236_v63 }
 0x370   : > { %1271 = vadd.xlane.f32.xlu0 %v1270_v32  ;;  %v1273_v30 = vadd.f32 %v1239_v43, %v1238_v62 }
 0x371   : > { %1424 = vmatmul.mubr.f32.gmra.mrb[22].mxu0 %v1167_v9 }
 0x372   : > { %1274 = vadd.xlane.f32.xlu1 %v1273_v30  ;;  %v1173_v19 = vpop.f32.mrb[24].mxu1 }
 0x373   : > { %v1240_v11 = vmul.f32 %v1173_v19, %v1173_v19  ;;  %v1175_v8 = vpop.f32.mrb[25].mxu1 }
 0x374   : > { %v1241_v29 = vmul.f32 %v1175_v8, %v1175_v8  ;;  %v1177_v46 = vpop.f32.mrb[26].mxu1  ;;  %1428 = vmatprep.mubr.f32.mxu0 %v1175_v8 }
 0x375   : > { %v1242_v27 = vmul.f32 %v1177_v46, %v1177_v46  ;;  %v1179_v53 = vpop.f32.mrb[27].mxu1  ;;  %1429 = vmatmul.mubr.f32.gmra.mrb[24].mxu0 %v1173_v19 }
 0x376   : > { %v1243_v41 = vmul.f32 %v1179_v53, %v1179_v53  ;;  %1433 = vmatprep.mubr.f32.mxu0 %v1179_v53  ;;  %v1276_v14 = vadd.f32 %v1241_v29, %v1240_v11 }
 0x378   : > { %1277 = vadd.xlane.f32.xlu0 %v1276_v14  ;;  %v1279_v52 = vadd.f32 %v1243_v41, %v1242_v27 }
 0x379   : > { %1434 = vmatmul.mubr.f32.gmra.mrb[26].mxu0 %v1177_v46 }
 0x37a   : > { %1280 = vadd.xlane.f32.xlu1 %v1279_v52  ;;  %v1183_v37 = vpop.f32.mrb[28].mxu1 }
 0x37b   : > { %v1244_v26 = vmul.f32 %v1183_v37, %v1183_v37  ;;  %v1185_v7 = vpop.f32.mrb[29].mxu1 }
 0x37c   : > { %v1245_v5 = vmul.f32 %v1185_v7, %v1185_v7  ;;  %v1187_v0 = vpop.f32.mrb[30].mxu1  ;;  %1438 = vmatprep.mubr.f32.mxu0 %v1185_v7 }
 0x37d   : > { %v1246_v44 = vmul.f32 %v1187_v0, %v1187_v0  ;;  %v1189_v6 = vpop.f32.mrb[31].mxu1  ;;  %1439 = vmatmul.mubr.f32.gmra.mrb[28].mxu0 %v1183_v37 }
 0x37e   : > { %v1247_v18 = vmul.f32 %v1189_v6, %v1189_v6  ;;  %1443 = vmatprep.mubr.f32.mxu0 %v1189_v6  ;;  %v1282_v4 = vadd.f32 %v1245_v5, %v1244_v26 }
 0x380   : > { %1283 = vadd.xlane.f32.xlu0 %v1282_v4  ;;  %v1285_v60 = vadd.f32 %v1247_v18, %v1246_v44 }
 0x381   : > { %1444 = vmatmul.mubr.f32.gmra.mrb[30].mxu0 %v1187_v0 }
 0x382   : > { %1286 = vadd.xlane.f32.xlu1 %v1285_v60  ;;  %v1193_v16 = vpop.f32.mrb[32].mxu1 }
 0x383   : > { %v1248_v40 = vmul.f32 %v1193_v16, %v1193_v16  ;;  %v1195_v49 = vpop.f32.mrb[33].mxu1 }
 0x384   : > { %v1249_v47 = vmul.f32 %v1195_v49, %v1195_v49  ;;  %v1197_v35 = vpop.f32.mrb[34].mxu1  ;;  %1448 = vmatprep.mubr.f32.mxu0 %v1195_v49 }
 0x385   : > { %v1250_v39 = vmul.f32 %v1197_v35, %v1197_v35  ;;  %v1199_v1 = vpop.f32.mrb[35].mxu1  ;;  %1449 = vmatmul.mubr.f32.gmra.mrb[32].mxu0 %v1193_v16 }
 0x386   : > { %v1251_v63 = vmul.f32 %v1199_v1, %v1199_v1  ;;  %1453 = vmatprep.mubr.f32.mxu0 %v1199_v1  ;;  %v1288_v48 = vadd.f32 %v1249_v47, %v1248_v40 }
 0x388   : > { %1289 = vadd.xlane.f32.xlu0 %v1288_v48  ;;  %v1291_v31 = vadd.f32 %v1251_v63, %v1250_v39 }
 0x389   : > { %1454 = vmatmul.mubr.f32.gmra.mrb[34].mxu0 %v1197_v35 }
 0x38a   : > { %1292 = vadd.xlane.f32.xlu1 %v1291_v31  ;;  %v1203_v9 = vpop.f32.mrb[36].mxu1 }
 0x38b   : > { %v1252_v62 = vmul.f32 %v1203_v9, %v1203_v9  ;;  %v1205_v22 = vpop.f32.mrb[37].mxu1 }
 0x38c   : > { %v1253_v43 = vmul.f32 %v1205_v22, %v1205_v22  ;;  %v1207_v32 = vpop.f32.mrb[38].mxu1  ;;  %1458 = vmatprep.mubr.f32.mxu0 %v1205_v22 }
 0x38d   : > { %v1254_v30 = vmul.f32 %v1207_v32, %v1207_v32  ;;  %v1209_v19 = vpop.f32.mrb[39].mxu1  ;;  %1459 = vmatmul.mubr.f32.gmra.mrb[36].mxu0 %v1203_v9 }
 0x38e   : > { %v1255_v11 = vmul.f32 %v1209_v19, %v1209_v19  ;;  %1463 = vmatprep.mubr.f32.mxu0 %v1209_v19  ;;  %v1294_v8 = vadd.f32 %v1253_v43, %v1252_v62 }
 0x390   : > { %1295 = vadd.xlane.f32.xlu0 %v1294_v8  ;;  %v1297_v29 = vadd.f32 %v1255_v11, %v1254_v30 }
 0x391   : > { %1464 = vmatmul.mubr.f32.gmra.mrb[38].mxu0 %v1207_v32 }
 0x392   : > { %1298 = vadd.xlane.f32.xlu1 %v1297_v29  ;;  %v1213_v46 = vpop.f32.mrb[40].mxu1 }
 0x393   : > { %v1256_v27 = vmul.f32 %v1213_v46, %v1213_v46  ;;  %v1215_v53 = vpop.f32.mrb[41].mxu1 }
 0x394   : > { %v1257_v41 = vmul.f32 %v1215_v53, %v1215_v53  ;;  %v1217_v14 = vpop.f32.mrb[42].mxu1  ;;  %1468 = vmatprep.mubr.f32.mxu0 %v1215_v53 }
 0x395   : > { %v1258_v52 = vmul.f32 %v1217_v14, %v1217_v14  ;;  %v1219_v37 = vpop.f32.mrb[43].mxu1  ;;  %1469 = vmatmul.mubr.f32.gmra.mrb[40].mxu0 %v1213_v46 }
 0x396   : > { %v1259_v26 = vmul.f32 %v1219_v37, %v1219_v37  ;;  %1473 = vmatprep.mubr.f32.mxu0 %v1219_v37  ;;  %v1300_v7 = vadd.f32 %v1257_v41, %v1256_v27 }
 0x398   : > { %1301 = vadd.xlane.f32.xlu0 %v1300_v7  ;;  %v1303_v5 = vadd.f32 %v1259_v26, %v1258_v52  ;;  %v2551_v7 = vld [vmem:[%s3081_s11] sm:$0xff] }
 0x399   : > { %1474 = vmatmul.mubr.f32.gmra.mrb[42].mxu0 %v1217_v14 }
 0x39a   : > { %1304 = vadd.xlane.f32.xlu1 %v1303_v5  ;;  %v1223_v0 = vpop.f32.mrb[44].mxu1 }
 0x39b   : > { %v1260_v44 = vmul.f32 %v1223_v0, %v1223_v0  ;;  %v1225_v6 = vpop.f32.mrb[45].mxu1 }
 0x39c   : > { %v1261_v18 = vmul.f32 %v1225_v6, %v1225_v6  ;;  %v1227_v4 = vpop.f32.mrb[46].mxu1  ;;  %1478 = vmatprep.mubr.f32.mxu0 %v1225_v6 }
 0x39d   : > { %v1262_v60 = vmul.f32 %v1227_v4, %v1227_v4  ;;  %v1229_v16 = vpop.f32.mrb[47].mxu1  ;;  %1479 = vmatmul.mubr.f32.gmra.mrb[44].mxu0 %v1223_v0 }
 0x39e   : > { %v1263_v40 = vmul.f32 %v1229_v16, %v1229_v16  ;;  %1483 = vmatprep.mubr.f32.mxu0 %v1229_v16  ;;  %v1306_v49 = vadd.f32 %v1261_v18, %v1260_v44 }
 0x3a0   : > { %1307 = vadd.xlane.f32.xlu0 %v1306_v49  ;;  %v1309_v47 = vadd.f32 %v1263_v40, %v1262_v60  ;;  %v2552_v49 = vld [vmem:[%s3081_s11 + $0x8] sm:$0xff] }
 0x3a1   : > { %1484 = vmatmul.mubr.f32.gmra.mrb[46].mxu0 %v1227_v4 }
 0x3a2   : > { %1310 = vadd.xlane.f32.xlu1 %v1309_v47 }
 0x3f5   : > { %v1266_v35 = vpop.xlane.xlu0 %1265 }
 0x3f6   : > { %v1312_v39 = vmax.f32 %v1266_v35, 1e-24 }
 0x3f7   : > { %v1269_v1 = vpop.xlane.xlu1 %1268 }
 0x3f8   : > { %2423 = vrsqrt.f32 %v1312_v39  ;;  %v1313_v63 = vmax.f32 %v1269_v1, 1e-24 }
 0x3fa   : > { %2425 = vrsqrt.f32 %v1313_v63 }
 0x3fd   : > { %v1272_v48 = vpop.xlane.xlu0 %1271 }
 0x3fe   : > { %v1314_v31 = vmax.f32 %v1272_v48, 1e-24 }
 0x3ff   : > { %v1275_v9 = vpop.xlane.xlu1 %1274 }
 0x400   : > { %2427 = vrsqrt.f32 %v1314_v31  ;;  %v1315_v62 = vmax.f32 %v1275_v9, 1e-24 }
 0x402   : > { %v2424_v43 = vpop.eup %2423  ;;  %2429 = vrsqrt.f32 %v1315_v62 }
 0x403   : > { %v1489_v11 = vmul.f32 3.5, %v2424_v43 }
 0x404   : > { %v2426_v46 = vpop.eup %2425 }
 0x405   : > { %v1278_v22 = vpop.xlane.xlu0 %1277  ;;  %v1490_v52 = vmul.f32 3.5, %v2426_v46 }
 0x406   : > { %v1316_v30 = vmax.f32 %v1278_v22, 1e-24  ;;  %v2553_v22 = vld [vmem:[%s3081_s11 + $0x10] sm:$0xff] }
 0x407   : > { %v1281_v8 = vpop.xlane.xlu1 %1280 }
 0x408   : > { %2431 = vrsqrt.f32 %v1316_v30  ;;  %v1317_v41 = vmax.f32 %v1281_v8, 1e-24 }
 0x40a   : > { %v2428_v0 = vpop.eup %2427  ;;  %2433 = vrsqrt.f32 %v1317_v41 }
 0x40b   : > { %v1491_v60 = vmul.f32 3.5, %v2428_v0 }
 0x40c   : > { %v2430_v35 = vpop.eup %2429 }
 0x40d   : > { %v1284_v37 = vpop.xlane.xlu0 %1283  ;;  %v1492_v31 = vmul.f32 3.5, %v2430_v35 }
 0x40e   : > { %v1318_v18 = vmax.f32 %v1284_v37, 1e-24 }
 0x40f   : > { %v1287_v16 = vpop.xlane.xlu1 %1286 }
 0x410   : > { %2435 = vrsqrt.f32 %v1318_v18  ;;  %v1319_v63 = vmax.f32 %v1287_v16, 1e-24  ;;  %v2555_v18 = vld [vmem:[%s3081_s11 + $0x20] sm:$0xff] }
 0x412   : > { %2437 = vrsqrt.f32 %v1319_v63 }
 0x415   : > { %v1290_v9 = vpop.xlane.xlu0 %1289 }
 0x417   : > { %v1293_v46 = vpop.xlane.xlu1 %1292 }
 0x438   : > { %v2112_v32 = vpop.f32.mrb[16].mxu0 }
 0x439   : > { %v2113_v19 = vpop.f32.mrb[17].mxu0 }
 0x43a   : > { %v2114_v29 = vadd.f32 %v2113_v19, %v2112_v32  ;;  %v2432_v32 = vpop.eup %2431 }
 0x43c   : > { %v1505_v27 = vmul.f32 %v2114_v29, %v1489_v11  ;;  %v2115_v53 = vpop.f32.mrb[18].mxu0  ;;  %v1320_v11 = vmax.f32 %v1290_v9, 1e-24  ;;  %v1493_v29 = vmul.f32 3.5, %v2432_v32 }
 0x43d   : > { %v2116_v14 = vpop.f32.mrb[19].mxu0 }
 0x43e   : > { %v2117_v26 = vadd.f32 %v2116_v14, %v2115_v53  ;;  %v3495_v5 = vadd.f32 %v2551_v7, %v1505_v27  ;;  %v2554_v53 = vld [vmem:[%s3081_s11 + $0x18] sm:$0xff]  ;;  %v2434_v14 = vpop.eup %2433  ;;  %2439 = vrsqrt.f32 %v1320_v11 }
 0x43f   : > { %v1494_v0 = vmul.f32 3.5, %v2434_v14 }
 0x440   : > { %v1506_v44 = vmul.f32 %v2117_v26, %v1490_v52  ;;  %v2118_v6 = vpop.f32.mrb[20].mxu0  ;;  %1537 = vmax.xlane.f32.xlu0 %v3495_v5  ;;  %v1321_v26 = vmax.f32 %v1293_v46, 1e-24 }
 0x441   : > { %v2119_v4 = vpop.f32.mrb[21].mxu0 }
 0x442   : > { %v2120_v40 = vadd.f32 %v2119_v4, %v2118_v6  ;;  %v3499_v47 = vadd.f32 %v2552_v49, %v1506_v44  ;;  %v1296_v44 = vpop.xlane.xlu0 %1295  ;;  %2441 = vrsqrt.f32 %v1321_v26 }
 0x443   : > { %v1322_v49 = vmax.f32 %v1296_v44, 1e-24  ;;  %v2558_v44 = vld [vmem:[%s3081_s11 + $0x38] sm:$0xff] }
 0x444   : > { %v1507_v39 = vmul.f32 %v2120_v40, %v1491_v60  ;;  %v2121_v1 = vpop.f32.mrb[22].mxu0  ;;  %1539 = vmax.xlane.f32.xlu1 %v3499_v47  ;;  %v2436_v60 = vpop.eup %2435 }
 0x445   : > { %v2122_v48 = vpop.f32.mrb[23].mxu0  ;;  %v2438_v9 = vpop.eup %2437  ;;  %2443 = vrsqrt.f32 %v1322_v49 }
 0x446   : > { %v2123_v62 = vadd.f32 %v2122_v48, %v2121_v1  ;;  %v3503_v43 = vadd.f32 %v2553_v22, %v1507_v39  ;;  %v1495_v39 = vmul.f32 3.5, %v2436_v60  ;;  %v1299_v1 = vpop.xlane.xlu1 %1298  ;;  %v2556_v48 = vld [vmem:[%s3081_s11 + $0x28] sm:$0xff]  ;;  %v1302_v11 = vpop.xlane.xlu0 %1301 }
 0x447   : > { %v1323_v32 = vmax.f32 %v1299_v1, 1e-24 }
 0x448   : > { %v1508_v30 = vmul.f32 %v2123_v62, %v1492_v31  ;;  %v2124_v19 = vpop.f32.mrb[24].mxu0  ;;  %1541 = vmax.xlane.f32.xlu0 %v3503_v43 }
 0x449   : > { %v2125_v8 = vpop.f32.mrb[25].mxu0  ;;  %2445 = vrsqrt.f32 %v1323_v32 }
 0x44a   : > { %v2126_v27 = vadd.f32 %v2125_v8, %v2124_v19  ;;  %v3507_v41 = vadd.f32 %v2554_v53, %v1508_v30  ;;  %v1496_v19 = vmul.f32 3.5, %v2438_v9 }
 0x44c   : > { %v1509_v52 = vmul.f32 %v2126_v27, %v1493_v29  ;;  %v2127_v37 = vpop.f32.mrb[26].mxu0  ;;  %1543 = vmax.xlane.f32.xlu1 %v3507_v41  ;;  %v2557_v29 = vld [vmem:[%s3081_s11 + $0x30] sm:$0xff]  ;;  %v2440_v27 = vpop.eup %2439 }
 0x44d   : > { %v2128_v7 = vpop.f32.mrb[27].mxu0  ;;  %v1497_v26 = vmul.f32 3.5, %v2440_v27 }
 0x44e   : > { %v2129_v6 = vadd.f32 %v2128_v7, %v2127_v37  ;;  %v3511_v4 = vadd.f32 %v2555_v18, %v1509_v52  ;;  %v1324_v52 = vmax.f32 %v1302_v11, 1e-24  ;;  %v1305_v7 = vpop.xlane.xlu1 %1304  ;;  %v2442_v18 = vpop.eup %2441 }
 0x44f   : > { %v2444_v9 = vpop.eup %2443 }
 0x450   : > { %v1510_v16 = vmul.f32 %v2129_v6, %v1494_v0  ;;  %v2130_v40 = vpop.f32.mrb[28].mxu0  ;;  %1545 = vmax.xlane.f32.xlu0 %v3511_v4  ;;  %2447 = vrsqrt.f32 %v1324_v52 }
 0x451   : > { %v2131_v35 = vpop.f32.mrb[29].mxu0 }
 0x452   : > { %v2132_v63 = vadd.f32 %v2131_v35, %v2130_v40  ;;  %v3515_v31 = vadd.f32 %v2556_v48, %v1510_v16  ;;  %v1325_v40 = vmax.f32 %v1305_v7, 1e-24  ;;  %v1498_v35 = vmul.f32 3.5, %v2442_v18  ;;  %v1311_v11 = vpop.xlane.xlu1 %1310 }
 0x454   : > { %v1511_v62 = vmul.f32 %v2132_v63, %v1495_v39  ;;  %v2133_v22 = vpop.f32.mrb[30].mxu0  ;;  %1547 = vmax.xlane.f32.xlu1 %v3515_v31  ;;  %v1308_v39 = vpop.xlane.xlu0 %1307  ;;  %v2559_v63 = vld [vmem:[%s3081_s11 + $0x40] sm:$0xff]  ;;  %2449 = vrsqrt.f32 %v1325_v40 }
 0x455   : > { %v2134_v30 = vpop.f32.mrb[31].mxu0  ;;  %v1326_v32 = vmax.f32 %v1308_v39, 1e-24 }
 0x456   : > { %v2135_v8 = vadd.f32 %v2134_v30, %v2133_v22  ;;  %v3519_v46 = vadd.f32 %v2557_v29, %v1511_v62  ;;  %v2560_v29 = vld [vmem:[%s3081_s11 + $0x48] sm:$0xff] }
 0x457   : > { %2451 = vrsqrt.f32 %v1326_v32 }
 0x458   : > { %v1512_v53 = vmul.f32 %v2135_v8, %v1496_v19  ;;  %v2136_v14 = vpop.f32.mrb[32].mxu0  ;;  %1549 = vmax.xlane.f32.xlu0 %v3519_v46  ;;  %v1499_v19 = vmul.f32 3.5, %v2444_v9 }
 0x459   : > { %v2137_v37 = vpop.f32.mrb[33].mxu0 }
 0x45a   : > { %v2138_v0 = vadd.f32 %v2137_v37, %v2136_v14  ;;  %v3523_v6 = vadd.f32 %v2558_v44, %v1512_v53  ;;  %v2446_v53 = vpop.eup %2445  ;;  %v1327_v37 = vmax.f32 %v1311_v11, 1e-24  ;;  %v2561_v44 = vld [vmem:[%s3081_s11 + $0x50] sm:$0xff]  ;;  %v2563_v11 = vld [vmem:[%s3081_s11 + $0x60] sm:$0xff] }
 0x45b   : > { %v1500_v7 = vmul.f32 3.5, %v2446_v53 }
 0x45c   : > { %v1513_v60 = vmul.f32 %v2138_v0, %v1497_v26  ;;  %v2139_v16 = vpop.f32.mrb[34].mxu0  ;;  %1551 = vmax.xlane.f32.xlu1 %v3523_v6  ;;  %2453 = vrsqrt.f32 %v1327_v37 }
 0x45d   : > { %v2140_v49 = vpop.f32.mrb[35].mxu0 }
 0x45e   : > { %v2141_v1 = vadd.f32 %v2140_v49, %v2139_v16  ;;  %v3527_v48 = vadd.f32 %v2559_v63, %v1513_v60  ;;  %v2448_v60 = vpop.eup %2447 }
 0x45f   : > { %v2450_v9 = vpop.eup %2449 }
 0x460   : > { %v1514_v62 = vmul.f32 %v2141_v1, %v1498_v35  ;;  %v2142_v22 = vpop.f32.mrb[36].mxu0  ;;  %1553 = vmax.xlane.f32.xlu0 %v3527_v48  ;;  %v1501_v35 = vmul.f32 3.5, %v2448_v60  ;;  %v2562_v1 = vld [vmem:[%s3081_s11 + $0x58] sm:$0xff] }
 0x461   : > { %v2143_v30 = vpop.f32.mrb[37].mxu0 }
 0x462   : > { %v2144_v8 = vadd.f32 %v2143_v30, %v2142_v22  ;;  %v3531_v27 = vadd.f32 %v2560_v29, %v1514_v62  ;;  %v1502_v30 = vmul.f32 3.5, %v2450_v9  ;;  %v2452_v29 = vpop.eup %2451 }
 0x463   : > { %v1503_v37 = vmul.f32 3.5, %v2452_v29 }
 0x464   : > { %v1515_v14 = vmul.f32 %v2144_v8, %v1499_v19  ;;  %v2145_v52 = vpop.f32.mrb[38].mxu0  ;;  %1555 = vmax.xlane.f32.xlu1 %v3531_v27 }
 0x465   : > { %v2146_v26 = vpop.f32.mrb[39].mxu0 }
 0x466   : > { %v2147_v0 = vadd.f32 %v2146_v26, %v2145_v52  ;;  %v3535_v18 = vadd.f32 %v2561_v44, %v1515_v14  ;;  %v2454_v44 = vpop.eup %2453 }
 0x468   : > { %v1516_v16 = vmul.f32 %v2147_v0, %v1500_v7  ;;  %v2148_v40 = vpop.f32.mrb[40].mxu0  ;;  %1557 = vmax.xlane.f32.xlu0 %v3535_v18  ;;  %v2564_v7 = vld [vmem:[%s3081_s11 + $0x68] sm:$0xff] }
 0x469   : > { %v2149_v49 = vpop.f32.mrb[41].mxu0 }
 0x46a   : > { %v2150_v39 = vadd.f32 %v2149_v49, %v2148_v40  ;;  %v3539_v63 = vadd.f32 %v2562_v1, %v1516_v16  ;;  %v1504_v49 = vmul.f32 3.5, %v2454_v44 }
 0x46c   : > { %v1517_v62 = vmul.f32 %v2150_v39, %v1501_v35  ;;  %v2151_v22 = vpop.f32.mrb[42].mxu0  ;;  %1559 = vmax.xlane.f32.xlu1 %v3539_v63  ;;  %v2565_v39 = vld [vmem:[%s3081_s11 + $0x70] sm:$0xff] }
 0x46d   : > { %v2152_v32 = vpop.f32.mrb[43].mxu0 }
 0x46e   : > { %v2153_v19 = vadd.f32 %v2152_v32, %v2151_v22  ;;  %v3543_v8 = vadd.f32 %v2563_v11, %v1517_v62  ;;  %v2566_v62 = vld [vmem:[%s3081_s11 + $0x78] sm:$0xff] }
 0x470   : > { %v1518_v53 = vmul.f32 %v2153_v19, %v1502_v30  ;;  %v2154_v14 = vpop.f32.mrb[44].mxu0  ;;  %1561 = vmax.xlane.f32.xlu0 %v3543_v8 }
 0x471   : > { %v2155_v52 = vpop.f32.mrb[45].mxu0 }
 0x472   : > { %v2156_v26 = vadd.f32 %v2155_v52, %v2154_v14  ;;  %v3547_v0 = vadd.f32 %v2564_v7, %v1518_v53 }
 0x474   : > { %v1519_v60 = vmul.f32 %v2156_v26, %v1503_v37  ;;  %v2157_v16 = vpop.f32.mrb[46].mxu0  ;;  %1563 = vmax.xlane.f32.xlu1 %v3547_v0 }
 0x475   : > { %v2158_v40 = vpop.f32.mrb[47].mxu0 }
 0x476   : > { %v2159_v35 = vadd.f32 %v2158_v40, %v2157_v16  ;;  %v3551_v1 = vadd.f32 %v2565_v39, %v1519_v60 }
 0x478   : > { %v1520_v9 = vmul.f32 %v2159_v35, %v1504_v49  ;;  %1565 = vmax.xlane.f32.xlu0 %v3551_v1 }
 0x47a   : > { %v3555_v22 = vadd.f32 %v2566_v62, %v1520_v9 }
 0x47c   : > { %1567 = vmax.xlane.f32.xlu1 %v3555_v22 }
 0x4cd   : > { %v1538_v32 = vpop.xlane.xlu0 %1537 }
 0x4ce   : > { %v3559_v30 = vsub.f32 %v3495_v5, %v1538_v32 }
 0x4d0   : > { %v1585_v19 = vmul.f32 1.442695, %v3559_v30 }
 0x4d1   : > { %v1540_v11 = vpop.xlane.xlu1 %1539 }
 0x4d2   : > { %2455 = vpow2.f32 %v1585_v19  ;;  %v3563_v29 = vsub.f32 %v3499_v47, %v1540_v11 }
 0x4d4   : > { %v1587_v53 = vmul.f32 1.442695, %v3563_v29 }
 0x4d5   : > { %v1542_v14 = vpop.xlane.xlu0 %1541 }
 0x4d6   : > { %2457 = vpow2.f32 %v1587_v53  ;;  %v3567_v52 = vsub.f32 %v3503_v43, %v1542_v14 }
 0x4d8   : > { %v1589_v37 = vmul.f32 1.442695, %v3567_v52 }
 0x4d9   : > { %v1544_v26 = vpop.xlane.xlu1 %1543 }
 0x4da   : > { %2459 = vpow2.f32 %v1589_v37  ;;  %v3571_v5 = vsub.f32 %v3507_v41, %v1544_v26 }
 0x4dc   : > { %v2456_v7 = vpop.eup %2455  ;;  %v1591_v44 = vmul.f32 1.442695, %v3571_v5 }
 0x4dd   : > { %1617 = vadd.xlane.f32.xlu0 %v2456_v7  ;;  %v1546_v47 = vpop.xlane.xlu0 %1545 }
 0x4de   : > { %2461 = vpow2.f32 %v1591_v44  ;;  %v3575_v60 = vsub.f32 %v3511_v4, %v1546_v47 }
 0x4e0   : > { %v2458_v16 = vpop.eup %2457  ;;  %v1593_v43 = vmul.f32 1.442695, %v3575_v60 }
 0x4e1   : > { %1619 = vadd.xlane.f32.xlu1 %v2458_v16  ;;  %v1548_v40 = vpop.xlane.xlu1 %1547 }
 0x4e2   : > { %2463 = vpow2.f32 %v1593_v43  ;;  %v3579_v49 = vsub.f32 %v3515_v31, %v1548_v40 }
 0x4e4   : > { %v2460_v41 = vpop.eup %2459  ;;  %v1595_v35 = vmul.f32 1.442695, %v3579_v49 }
 0x4e5   : > { %1621 = vadd.xlane.f32.xlu0 %v2460_v41  ;;  %v1550_v39 = vpop.xlane.xlu0 %1549 }
 0x4e6   : > { %2465 = vpow2.f32 %v1595_v35  ;;  %v3583_v9 = vsub.f32 %v3519_v46, %v1550_v39 }
 0x4e8   : > { %v2462_v4 = vpop.eup %2461  ;;  %v1597_v62 = vmul.f32 1.442695, %v3583_v9 }
 0x4e9   : > { %1623 = vadd.xlane.f32.xlu1 %v2462_v4  ;;  %v1552_v32 = vpop.xlane.xlu1 %1551 }
 0x4ea   : > { %2467 = vpow2.f32 %v1597_v62  ;;  %v3587_v19 = vsub.f32 %v3523_v6, %v1552_v32 }
 0x4ec   : > { %v2464_v31 = vpop.eup %2463  ;;  %v1599_v11 = vmul.f32 1.442695, %v3587_v19 }
 0x4ed   : > { %1625 = vadd.xlane.f32.xlu0 %v2464_v31  ;;  %v1554_v53 = vpop.xlane.xlu0 %1553 }
 0x4ee   : > { %2469 = vpow2.f32 %v1599_v11  ;;  %v3591_v14 = vsub.f32 %v3527_v48, %v1554_v53 }
 0x4f0   : > { %v2466_v46 = vpop.eup %2465  ;;  %v1601_v37 = vmul.f32 1.442695, %v3591_v14 }
 0x4f1   : > { %1627 = vadd.xlane.f32.xlu1 %v2466_v46  ;;  %v1556_v26 = vpop.xlane.xlu1 %1555 }
 0x4f2   : > { %2471 = vpow2.f32 %v1601_v37  ;;  %v3595_v7 = vsub.f32 %v3531_v27, %v1556_v26 }
 0x4f4   : > { %v2468_v6 = vpop.eup %2467  ;;  %v1603_v44 = vmul.f32 1.442695, %v3595_v7 }
 0x4f5   : > { %1629 = vadd.xlane.f32.xlu0 %v2468_v6  ;;  %v1558_v47 = vpop.xlane.xlu0 %1557 }
 0x4f6   : > { %2473 = vpow2.f32 %v1603_v44  ;;  %v3599_v16 = vsub.f32 %v3535_v18, %v1558_v47 }
 0x4f8   : > { %v2470_v48 = vpop.eup %2469  ;;  %v1605_v43 = vmul.f32 1.442695, %v3599_v16 }
 0x4f9   : > { %1631 = vadd.xlane.f32.xlu1 %v2470_v48  ;;  %v1560_v40 = vpop.xlane.xlu1 %1559 }
 0x4fa   : > { %2475 = vpow2.f32 %v1605_v43  ;;  %v3603_v41 = vsub.f32 %v3539_v63, %v1560_v40 }
 0x4fc   : > { %v2472_v27 = vpop.eup %2471  ;;  %v1607_v35 = vmul.f32 1.442695, %v3603_v41 }
 0x4fd   : > { %1633 = vadd.xlane.f32.xlu0 %v2472_v27  ;;  %v1562_v39 = vpop.xlane.xlu0 %1561 }
 0x4fe   : > { %2477 = vpow2.f32 %v1607_v35  ;;  %v3607_v4 = vsub.f32 %v3543_v8, %v1562_v39 }
 0x500   : > { %v2474_v18 = vpop.eup %2473  ;;  %v1609_v62 = vmul.f32 1.442695, %v3607_v4 }
 0x501   : > { %1635 = vadd.xlane.f32.xlu1 %v2474_v18  ;;  %v1564_v32 = vpop.xlane.xlu1 %1563 }
 0x502   : > { %2479 = vpow2.f32 %v1609_v62  ;;  %v3611_v31 = vsub.f32 %v3547_v0, %v1564_v32 }
 0x504   : > { %v2476_v63 = vpop.eup %2475  ;;  %v1611_v11 = vmul.f32 1.442695, %v3611_v31 }
 0x505   : > { %1637 = vadd.xlane.f32.xlu0 %v2476_v63  ;;  %v1566_v53 = vpop.xlane.xlu0 %1565 }
 0x506   : > { %2481 = vpow2.f32 %v1611_v11  ;;  %v3615_v46 = vsub.f32 %v3551_v1, %v1566_v53 }
 0x508   : > { %v2478_v8 = vpop.eup %2477  ;;  %v1613_v37 = vmul.f32 1.442695, %v3615_v46 }
 0x509   : > { %1639 = vadd.xlane.f32.xlu1 %v2478_v8  ;;  %v1568_v26 = vpop.xlane.xlu1 %1567 }
 0x50a   : > { %2483 = vpow2.f32 %v1613_v37  ;;  %v3619_v6 = vsub.f32 %v3555_v22, %v1568_v26 }
 0x50c   : > { %v2480_v0 = vpop.eup %2479  ;;  %v1615_v44 = vmul.f32 1.442695, %v3619_v6 }
 0x50d   : > { %1641 = vadd.xlane.f32.xlu0 %v2480_v0 }
 0x50e   : > { %2485 = vpow2.f32 %v1615_v44 }
 0x50f   : > { %2487 = vlog2.f32 %v3326_v54 }
 0x510   : > { %v2482_v47 = vpop.eup %2481  ;;  %2489 = vlog2.f32 %v3329_v55  ;;  %v3630_v55 = vld [vmem:[%s3757_s1] ss:$0 sm:$0xff] }
 0x511   : > { %1643 = vadd.xlane.f32.xlu1 %v2482_v47 }
 0x514   : > { %v2484_v48 = vpop.eup %2483 }
 0x515   : > { %1645 = vadd.xlane.f32.xlu0 %v2484_v48 }
 0x518   : > { %v2486_v1 = vpop.eup %2485 }
 0x519   : > { %1647 = vadd.xlane.f32.xlu1 %v2486_v1  ;;  %v2488_v40 = vpop.eup %2487 }
 0x51a   : > { %v2490_v35 = vpop.eup %2489  ;;  %v631_v39 = vmul.f32 0.6931472, %v2488_v40 }
 0x51b   : > { %v633_v32 = vmul.f32 0.6931472, %v2490_v35 }
 0x51d   : > { %v663_v48 = vsub.f32 %v3191_v56, %v633_v32  ;;  %v3838_v32 = vld [vmem:[#allocation30_spill] sm:$0xff] }
 0x56a   : > { %v1618_v43 = vpop.xlane.xlu0 %1617 }
 0x56b   : > { %2491 = vlog2.f32 %v1618_v43 }
 0x56c   : > { %2493 = vlog2.f32 %v3331_v58 }
 0x56e   : > { %v1620_v22 = vpop.xlane.xlu1 %1619 }
 0x56f   : > { %2495 = vlog2.f32 %v1620_v22 }
 0x570   : > { %2497 = vlog2.f32 %v3335_v59  ;;  %v662_v59 = vsub.f32 %v3183_v50, %v631_v39  ;;  %v1705_v39 = vmul.f32 %v3630_v55, %v3363_v42 }
 0x572   : > { %v1622_v27 = vpop.xlane.xlu0 %1621 }
 0x573   : > { %2499 = vlog2.f32 %v1622_v27 }
 0x574   : > { %2501 = vlog2.f32 %v3337_v61  ;;  %v1703_v61 = vmul.f32 %v3630_v55, %v3346_v12 }
 0x575   : > { %v2492_v18 = vpop.eup %2491 }
 0x576   : > { %v1650_v62 = vmul.f32 0.6931472, %v2492_v18  ;;  %v1624_v54 = vpop.xlane.xlu1 %1623  ;;  %v2494_v58 = vpop.eup %2493 }
 0x577   : > { %2503 = vlog2.f32 %v1624_v54  ;;  %v635_v0 = vmul.f32 0.6931472, %v2494_v58 }
 0x578   : > { %v1681_v63 = vsub.f32 %v3559_v30, %v1650_v62  ;;  %2505 = vlog2.f32 %v3341_v2  ;;  %v1704_v2 = vmul.f32 %v3630_v55, %v3357_v36 }
 0x579   : > { %v2496_v11 = vpop.eup %2495  ;;  %v664_v22 = vsub.f32 %v3186_v51, %v635_v0 }
 0x57a   : > { %v1652_v53 = vmul.f32 0.6931472, %v2496_v11  ;;  %v1626_v8 = vpop.xlane.xlu0 %1625  ;;  %v1719_v37 = vsub.f32 %v662_v59, %v1681_v63  ;;  %v2498_v26 = vpop.eup %2497  ;;  %v1706_v59 = vmul.f32 %v3630_v55, %v3373_v23 }
 0x57b   : > { %2507 = vlog2.f32 %v1626_v8  ;;  %v637_v40 = vmul.f32 0.6931472, %v2498_v26  ;;  %v3840_v26 = vld [vmem:[#allocation31_spill] sm:$0xff] }
 0x57c   : > { %v1682_v44 = vsub.f32 %v3563_v29, %v1652_v53  ;;  %v1735_v47 = vmul.f32 %v1719_v37, %v1703_v61  ;;  %2509 = vlog2.f32 %v3343_v3  ;;  %v3839_v53 = vld [vmem:[#allocation18_spill] sm:$0xff] }
 0x57d   : > { %v2500_v30 = vpop.eup %2499  ;;  %v665_v62 = vsub.f32 %v3194_v57, %v637_v40 }
 0x57e   : > { %v1654_v50 = vmul.f32 0.6931472, %v2500_v30  ;;  %v1628_v1 = vpop.xlane.xlu1 %1627  ;;  %1751 = vadd.xlane.f32.xlu0 %v1735_v47  ;;  %v1720_v43 = vsub.f32 %v663_v48, %v1682_v44  ;;  %v2502_v12 = vpop.eup %2501  ;;  %v1707_v47 = vmul.f32 %v3630_v55, %v3379_v38  ;;  %v3841_v30 = vld [vmem:[#allocation19_spill] sm:$0xff] }
 0x57f   : > { %2511 = vlog2.f32 %v1628_v1  ;;  %v639_v54 = vmul.f32 0.6931472, %v2502_v12  ;;  %v3842_v12 = vld [vmem:[#allocation32_spill] sm:$0xff] }
 0x580   : > { %v1683_v29 = vsub.f32 %v3567_v52, %v1654_v50  ;;  %v1736_v27 = vmul.f32 %v1720_v43, %v1704_v2  ;;  %2513 = vlog2.f32 %v3352_v24 }
 0x581   : > { %v2504_v35 = vpop.eup %2503  ;;  %v666_v8 = vsub.f32 %v3839_v53, %v639_v54 }
 0x582   : > { %v1656_v56 = vmul.f32 0.6931472, %v2504_v35  ;;  %1753 = vadd.xlane.f32.xlu1 %v1736_v27  ;;  %v1630_v3 = vpop.xlane.xlu0 %1629  ;;  %v1721_v18 = vsub.f32 %v664_v22, %v1683_v29  ;;  %v2506_v36 = vpop.eup %2505  ;;  %v1708_v29 = vmul.f32 %v3630_v55, %v3389_v17  ;;  %v3843_v35 = vld [vmem:[#allocation20_spill] sm:$0xff] }
 0x583   : > { %2515 = vlog2.f32 %v1630_v3  ;;  %v641_v61 = vmul.f32 0.6931472, %v2506_v36  ;;  %v3844_v36 = vld [vmem:[#allocation33_spill] sm:$0xff] }
 0x584   : > { %v1684_v51 = vsub.f32 %v3571_v5, %v1656_v56  ;;  %v1737_v58 = vmul.f32 %v1721_v18, %v1705_v39  ;;  %2517 = vlog2.f32 %v3838_v32 }
 0x585   : > { %v2508_v52 = vpop.eup %2507  ;;  %v667_v50 = vsub.f32 %v3841_v30, %v641_v61 }
 0x586   : > { %v1658_v63 = vmul.f32 0.6931472, %v2508_v52  ;;  %v1632_v24 = vpop.xlane.xlu1 %1631  ;;  %1755 = vadd.xlane.f32.xlu0 %v1737_v58  ;;  %v1722_v11 = vsub.f32 %v665_v62, %v1684_v51  ;;  %v2510_v42 = vpop.eup %2509  ;;  %v1709_v51 = vmul.f32 %v3630_v55, %v3395_v21  ;;  %v3845_v52 = vld [vmem:[#allocation21_spill] sm:$0xff] }
 0x587   : > { %2519 = vlog2.f32 %v1632_v24  ;;  %v643_v1 = vmul.f32 0.6931472, %v2510_v42 }
 0x588   : > { %v1685_v57 = vsub.f32 %v3575_v60, %v1658_v63  ;;  %v1738_v37 = vmul.f32 %v1722_v11, %v1706_v59  ;;  %2521 = vlog2.f32 %v3840_v26  ;;  %v3846_v11 = vld [vmem:[#allocation34_spill] sm:$0xff] }
 0x589   : > { %v2512_v5 = vpop.eup %2511  ;;  %v668_v56 = vsub.f32 %v3843_v35, %v643_v1 }
 0x58a   : > { %v1660_v0 = vmul.f32 0.6931472, %v2512_v5  ;;  %1757 = vadd.xlane.f32.xlu1 %v1738_v37  ;;  %v1634_v44 = vpop.xlane.xlu0 %1633  ;;  %v1723_v48 = vsub.f32 %v666_v8, %v1685_v57  ;;  %v2514_v23 = vpop.eup %2513  ;;  %v1710_v8 = vmul.f32 %v3630_v55, %v3405_v13  ;;  %v3847_v57 = vld [vmem:[#allocation22_spill] sm:$0xff] }
 0x58b   : > { %2523 = vlog2.f32 %v1634_v44  ;;  %v645_v3 = vmul.f32 0.6931472, %v2514_v23  ;;  %v3848_v44 = vld [vmem:[#allocation35_spill] sm:$0xff]  ;;  %v1711_v23 = vmul.f32 %v3630_v55, %v3411_v20 }
 0x58c   : > { %v1686_v2 = vsub.f32 %v3579_v49, %v1660_v0  ;;  %v1739_v43 = vmul.f32 %v1723_v48, %v1707_v47  ;;  %2525 = vlog2.f32 %v3842_v12  ;;  %v3850_v12 = vld [vmem:[#allocation36_spill] sm:$0xff] }
 0x58d   : > { %v2516_v60 = vpop.eup %2515  ;;  %v669_v32 = vsub.f32 %v3845_v52, %v645_v3 }
 0x58e   : > { %v1662_v22 = vmul.f32 0.6931472, %v2516_v60  ;;  %v1636_v40 = vpop.xlane.xlu1 %1635  ;;  %1759 = vadd.xlane.f32.xlu0 %v1739_v43  ;;  %v1724_v27 = vsub.f32 %v667_v50, %v1686_v2  ;;  %v2518_v38 = vpop.eup %2517  ;;  %v3849_v50 = vld [vmem:[#allocation23_spill] sm:$0xff] }
 0x58f   : > { %2527 = vlog2.f32 %v1636_v40  ;;  %v647_v63 = vmul.f32 0.6931472, %v2518_v38  ;;  %v3851_v38 = vld [vmem:[#allocation24_spill] sm:$0xff] }
 0x590   : > { %v1687_v39 = vsub.f32 %v3583_v9, %v1662_v22  ;;  %v1740_v18 = vmul.f32 %v1724_v27, %v1708_v29  ;;  %2529 = vlog2.f32 %v3844_v36  ;;  %v1712_v29 = vmul.f32 %v3630_v55, %v3419_v15 }
 0x591   : > { %v2520_v49 = vpop.eup %2519  ;;  %v670_v37 = vsub.f32 %v3847_v57, %v647_v63 }
 0x592   : > { %v1664_v62 = vmul.f32 0.6931472, %v2520_v49  ;;  %1761 = vadd.xlane.f32.xlu1 %v1740_v18  ;;  %v1638_v54 = vpop.xlane.xlu0 %1637  ;;  %v1725_v58 = vsub.f32 %v668_v56, %v1687_v39  ;;  %v2522_v17 = vpop.eup %2521  ;;  %v3852_v18 = vld [vmem:[#allocation37_spill] sm:$0xff] }
 0x593   : > { %2531 = vlog2.f32 %v1638_v54  ;;  %v649_v5 = vmul.f32 0.6931472, %v2522_v17 }
 0x594   : > { %v1688_v24 = vsub.f32 %v3587_v19, %v1664_v62  ;;  %v1741_v59 = vmul.f32 %v1725_v58, %v1709_v51  ;;  %2533 = vlog2.f32 %v3846_v11  ;;  %v1713_v62 = vmul.f32 %v3630_v55, %v3425_v25  ;;  %v3853_v51 = vld [vmem:[#allocation25_spill] sm:$0xff]  ;;  %v3854_v25 = vld [vmem:[#allocation26_spill] sm:$0xff] }
 0x595   : > { %v2524_v9 = vpop.eup %2523  ;;  %v671_v1 = vsub.f32 %v3849_v50, %v649_v5 }
 0x596   : > { %v1666_v42 = vmul.f32 0.6931472, %v2524_v9  ;;  %v1640_v53 = vpop.xlane.xlu1 %1639  ;;  %1763 = vadd.xlane.f32.xlu0 %v1741_v59  ;;  %v1726_v61 = vsub.f32 %v669_v32, %v1688_v24  ;;  %v2526_v21 = vpop.eup %2525  ;;  %v1714_v59 = vmul.f32 %v3630_v55, %v3430_v28 }
 0x597   : > { %2535 = vlog2.f32 %v1640_v53  ;;  %v651_v2 = vmul.f32 0.6931472, %v2526_v21 }
 0x598   : > { %v1689_v26 = vsub.f32 %v3591_v14, %v1666_v42  ;;  %v1742_v0 = vmul.f32 %v1726_v61, %v1710_v8  ;;  %2537 = vlog2.f32 %v3848_v44 }
 0x599   : > { %v2528_v19 = vpop.eup %2527  ;;  %v672_v35 = vsub.f32 %v3851_v38, %v651_v2 }
 0x59a   : > { %v1668_v47 = vmul.f32 0.6931472, %v2528_v19  ;;  %1765 = vadd.xlane.f32.xlu1 %v1742_v0  ;;  %v1642_v48 = vpop.xlane.xlu0 %1641  ;;  %v1727_v30 = vsub.f32 %v670_v37, %v1689_v26  ;;  %v2530_v13 = vpop.eup %2529  ;;  %v3855_v26 = vld [vmem:[#allocation27_spill] sm:$0xff] }
 0x59b   : > { %2539 = vlog2.f32 %v1642_v48  ;;  %v653_v56 = vmul.f32 0.6931472, %v2530_v13 }
 0x59c   : > { %v1690_v43 = vsub.f32 %v3595_v7, %v1668_v47  ;;  %v1743_v60 = vmul.f32 %v1727_v30, %v1711_v23  ;;  %2541 = vlog2.f32 %v3850_v12  ;;  %v3856_v30 = vld [vmem:[#allocation28_spill] sm:$0xff] }
 0x59d   : > { %v2532_v14 = vpop.eup %2531  ;;  %v673_v58 = vsub.f32 %v3853_v51, %v653_v56 }
 0x59e   : > { %v1670_v22 = vmul.f32 0.6931472, %v2532_v14  ;;  %v1644_v40 = vpop.xlane.xlu1 %1643  ;;  %1767 = vadd.xlane.f32.xlu0 %v1743_v60  ;;  %v1728_v27 = vsub.f32 %v671_v1, %v1690_v43  ;;  %v2534_v20 = vpop.eup %2533  ;;  %v3857_v14 = vld [vmem:[#allocation29_spill] sm:$0xff] }
 0x59f   : > { %2543 = vlog2.f32 %v1644_v40  ;;  %v655_v17 = vmul.f32 0.6931472, %v2534_v20 }
 0x5a0   : > { %v1691_v3 = vsub.f32 %v3599_v16, %v1670_v22  ;;  %v1744_v39 = vmul.f32 %v1728_v27, %v1712_v29  ;;  %2545 = vlog2.f32 %v3852_v18 }
 0x5a1   : > { %v2536_v7 = vpop.eup %2535  ;;  %v674_v42 = vsub.f32 %v3854_v25, %v655_v17 }
 0x5a2   : > { %v1672_v49 = vmul.f32 0.6931472, %v2536_v7  ;;  %1769 = vadd.xlane.f32.xlu1 %v1744_v39  ;;  %v1646_v36 = vpop.xlane.xlu0 %1645  ;;  %v1729_v54 = vsub.f32 %v672_v35, %v1691_v3  ;;  %v2538_v15 = vpop.eup %2537 }
 0x5a3   : > { %2547 = vlog2.f32 %v1646_v36  ;;  %v657_v53 = vmul.f32 0.6931472, %v2538_v15 }
 0x5a4   : > { %v1692_v52 = vsub.f32 %v3603_v41, %v1672_v49  ;;  %v1745_v32 = vmul.f32 %v1729_v54, %v1713_v62  ;;  %v1715_v41 = vmul.f32 %v3630_v55, %v3435_v10 }
 0x5a5   : > { %v2540_v16 = vpop.eup %2539  ;;  %v675_v0 = vsub.f32 %v3855_v26, %v657_v53 }
 0x5a6   : > { %v1674_v63 = vmul.f32 0.6931472, %v2540_v16  ;;  %v1648_v24 = vpop.xlane.xlu1 %1647  ;;  %1771 = vadd.xlane.f32.xlu0 %v1745_v32  ;;  %v1730_v9 = vsub.f32 %v673_v58, %v1692_v52  ;;  %v2542_v11 = vpop.eup %2541 }
 0x5a7   : > { %2549 = vlog2.f32 %v1648_v24  ;;  %v659_v28 = vmul.f32 0.6931472, %v2542_v11 }
 0x5a8   : > { %v1693_v8 = vsub.f32 %v3607_v4, %v1674_v63  ;;  %v1746_v61 = vmul.f32 %v1730_v9, %v1714_v59  ;;  %v1716_v4 = vmul.f32 %v3630_v55, %v3440_v33  ;;  %v1718_v33 = vmul.f32 %v3630_v55, %v3451_v45 }
 0x5a9   : > { %v2544_v21 = vpop.eup %2543  ;;  %v676_v13 = vsub.f32 %v3856_v30, %v659_v28 }
 0x5aa   : > { %v1676_v57 = vmul.f32 0.6931472, %v2544_v21  ;;  %1773 = vadd.xlane.f32.xlu1 %v1746_v61  ;;  %v1731_v37 = vsub.f32 %v674_v42, %v1693_v8  ;;  %v2546_v5 = vpop.eup %2545 }
 0x5ab   : > { %v661_v50 = vmul.f32 0.6931472, %v2546_v5 }
 0x5ac   : > { %v1694_v19 = vsub.f32 %v3611_v31, %v1676_v57  ;;  %v1747_v44 = vmul.f32 %v1731_v37, %v1715_v41  ;;  %v1717_v31 = vmul.f32 %v3630_v55, %v3445_v34 }
 0x5ad   : > { %v2548_v47 = vpop.eup %2547  ;;  %v677_v12 = vsub.f32 %v3857_v14, %v661_v50 }
 0x5ae   : > { %v1678_v48 = vmul.f32 0.6931472, %v2548_v47  ;;  %1775 = vadd.xlane.f32.xlu0 %v1747_v44  ;;  %v1732_v23 = vsub.f32 %v675_v0, %v1694_v19 }
 0x5b0   : > { %v1695_v10 = vsub.f32 %v3615_v46, %v1678_v48  ;;  %v1748_v1 = vmul.f32 %v1732_v23, %v1716_v4 }
 0x5b1   : > { %v2550_v2 = vpop.eup %2549 }
 0x5b2   : > { %v1680_v43 = vmul.f32 0.6931472, %v2550_v2  ;;  %1777 = vadd.xlane.f32.xlu1 %v1748_v1  ;;  %v1733_v60 = vsub.f32 %v676_v13, %v1695_v10 }
 0x5b4   : > { %v1696_v22 = vsub.f32 %v3619_v6, %v1680_v43  ;;  %v1749_v40 = vmul.f32 %v1733_v60, %v1717_v31 }
 0x5b6   : > { %1779 = vadd.xlane.f32.xlu0 %v1749_v40  ;;  %v1734_v29 = vsub.f32 %v677_v12, %v1696_v22 }
 0x5b8   : > { %v1750_v27 = vmul.f32 %v1734_v29, %v1718_v33 }
 0x5ba   : > { %1781 = vadd.xlane.f32.xlu1 %v1750_v27 }
 0x60b   : > { %v1752_v46 = vpop.xlane.xlu0 %1751 }
 0x60f   : > { %v1754_v20 = vpop.xlane.xlu1 %1753 }
 0x610   : > { %v1783_v35 = vadd.f32 %v1754_v20, %v1752_v46 }
 0x613   : > { %v1756_v38 = vpop.xlane.xlu0 %1755 }
 0x614   : > { %v1784_v3 = vadd.f32 %v1783_v35, %v1756_v38 }
 0x617   : > { %v1758_v56 = vpop.xlane.xlu1 %1757 }
 0x618   : > { %v1785_v39 = vadd.f32 %v1784_v3, %v1758_v56 }
 0x61b   : > { %v1760_v34 = vpop.xlane.xlu0 %1759 }
 0x61c   : > { %v1786_v18 = vadd.f32 %v1785_v39, %v1760_v34 }
 0x61f   : > { %v1762_v7 = vpop.xlane.xlu1 %1761 }
 0x620   : > { %v1787_v6 = vadd.f32 %v1786_v18, %v1762_v7 }
 0x623   : > { %v1764_v49 = vpop.xlane.xlu0 %1763 }
 0x624   : > { %v1788_v62 = vadd.f32 %v1787_v6, %v1764_v49 }
 0x627   : > { %v1766_v36 = vpop.xlane.xlu1 %1765 }
 0x628   : > { %v1789_v15 = vadd.f32 %v1788_v62, %v1766_v36 }
 0x62b   : > { %v1768_v54 = vpop.xlane.xlu0 %1767 }
 0x62c   : > { %v1790_v55 = vadd.f32 %v1789_v15, %v1768_v54 }
 0x62f   : > { %v1770_v45 = vpop.xlane.xlu1 %1769 }
 0x630   : > { %v1791_v58 = vadd.f32 %v1790_v55, %v1770_v45 }
 0x633   : > { %v1772_v51 = vpop.xlane.xlu0 %1771 }
 0x634   : > { %v1792_v52 = vadd.f32 %v1791_v58, %v1772_v51 }
 0x637   : > { %v1774_v17 = vpop.xlane.xlu1 %1773 }
 0x638   : > { %v1793_v16 = vadd.f32 %v1792_v52, %v1774_v17 }
 0x63b   : > { %v1776_v32 = vpop.xlane.xlu0 %1775 }
 0x63c   : > { %v1794_v24 = vadd.f32 %v1793_v16, %v1776_v32 }
 0x63f   : > { %v1778_v63 = vpop.xlane.xlu1 %1777 }
 0x640   : > { %v1795_v9 = vadd.f32 %v1794_v24, %v1778_v63 }
 0x643   : > { %v1780_v59 = vpop.xlane.xlu0 %1779 }
 0x644   : > { %v1796_v11 = vadd.f32 %v1795_v9, %v1780_v59 }
 0x647   : > { %v1782_v25 = vpop.xlane.xlu1 %1781 }
 0x648   : > { %v1797_v42 = vadd.f32 %v1796_v11, %v1782_v25 }
 0x64a   : > { %v1798_v53 = vrot.slane %v1797_v42, 4 }
 0x64c   : > { %v1799_v8 = vadd.f32 %v1798_v53, %v1797_v42 }
 0x64e   : > { %v1800_v61 = vrot.slane %v1799_v8, 2 }
 0x650   : > { %v1801_v21 = vadd.f32 %v1800_v61, %v1799_v8 }
 0x652   : > { %v1802_v57 = vrot.slane %v1801_v21, 1 }
 0x654   : > { %v1803_v41 = vadd.f32 %v1802_v57, %v1801_v21 }
 0x656   : > { %1804 = vst [vmem:[%s353_s7] sm:$0xff] %v1803_v41 }
 0x657   : > { %2724 = shalt.err (!%p2721_p3)
}
 0x658   : > { %s2725_s30 = scalar_lea.hbm %s3712_s4, 128  ;;  %s2729_s11 = scalar_lea.hbm %s3762_s6, 256 }
 0x659   : > { %p2726_p9 = scmp.ne.s32.totalorder %s3712_s4, %s2725_s30  ;;  %p2730_p7 = scmp.lt.u32.totalorder %s3712_s4, %s3762_s6 }
 0x65a   : > { %p2731_p12 = scmp.lt.u32.totalorder %s2729_s11, %s2725_s30  ;;  %p2733_p1 = scmp.lt.u32.totalorder %s2725_s30, %s3712_s4 }
 0x65b   : > { %p2727_p13 = pnand %p2726_p9, %p2985_p5 }
 0x65c   : > { %p2732_p2 = por %p2731_p12, %p2730_p7 }
 0x65d   : > { %p2728_p11 = pneg %p2727_p13 }
 0x65e   : > { %p2734_p4 = por %p2733_p1, %p2732_p2 }
 0x660   : > { %p2735_p0 = pnand %p2734_p4, %p2728_p11 }
 0x662   : > { %2738 = shalt.err (!%p2735_p0)
}
 0x663   : > { %2224 = dma.vmem_to_hbm [thread:$0]  (%p2985_p5), %s3714_s13, 128, %s3712_s4, %s1806_s15  }
 0x664 PF: > { %s1831_s8 = sand.u32 1, %s2777_s21   ;;  %p3858_p8 = scmp.ne.s32.totalorder %s3797_s28, 0 }
 0x665   : > { %p3859_p6 = scmp.ge.s32.totalorder %s2789_s24, 2  ;;  %s1832_s27 = scalar_lea.sflag [#allocation4], %s1831_s8 }
 0x667   : > { %p2244_p10 = pnand %p3859_p6, %p3858_p8 }
 0x669   : > { %2772 = dma.done.wait (!%p2244_p10), %s1832_s27, 128  }
 0x66a   : > { %2774 = vsyncadd (!%p2244_p10), %s1832_s27, 4294967168  ;;  %s3860_s5 = sld [smem:[#allocation17_spill]]  ;;  %p23_p3 = scmp.ge.s32.totalorder %s2950_s12, 4  }
 0x66b   : > { %s3861_s21 = smov %s2781_s22  ;;  %s3862_s22 = smov %s2785_s23 }
 0x66c   : > { %s3864_s24 = smov %s2950_s12  ;;  %25 = sbr.rel (!%p23_p3) target bundleno = 13 (0xd), region = 114 }
 0x670   : > { %s3863_s23 = smov %s3860_s5 }
 0x673   :  { %1837 = vsyncpa [#allocation3], 1 }
 0x674   :  { %1839 = vsyncpa [#allocation3 + $0x1], 1 }
 0x675   :  { %1840 = vsyncpa [#allocation6], 1 }
 0x676   :  { %1842 = vsyncpa [#allocation6 + $0x1], 1 }
 0x677   :  { %1843 = vsyncpa [#allocation9], 1 }
 0x678   :  { %1844 = vsyncpa [#allocation4], 1 }
 0x679   :  { %1846 = vsyncpa [#allocation4 + $0x1], 1 }

</bundles_post_ra>
